<compile_context>
chip_gen: v7x
topology: tpu7x:2x2x1
jax: 0.10.0
libtpu: 0.0.40
codegen_flags: <defaults>
</compile_context>

<pallas_src>
import functools

import jax
import jax.numpy as jnp
from jax.experimental import pallas as pl
from jax.experimental.pallas import tpu as pltpu


# ---------------------------------------------------------------------------
# Pallas kernel: one (batch, row-tile) step of the CoBi combination.
# ---------------------------------------------------------------------------
def _cobi_kernel(x_ref, y_ref, csp_ref, out_ref, *, weight_sp, inv_band_width):
    x = x_ref[...]      # (TM, C)   normalized x features (row tile)
    y = y_ref[...]      # (C, HW)   normalized y features (full)
    csp = csp_ref[...]  # (TM, HW)  precomputed weight_sp * cx_spatial (row tile)

    # ---- feature cosine similarity on the MXU ----
    sim = jnp.dot(x, y, preferred_element_type=jnp.float32)      # (TM, HW)

    # ---- fused relative distance + CX weights ----
    # dist = 1 - sim ; rowmin(dist) = 1 - rowmax(sim)
    # d_tilde = dist / (rowmin(dist) + 1e-5)
    # w = exp((1 - d_tilde) / bw) == exp((sim - smax) * a + c)  with per-row a, c.
    smax = jnp.max(sim, axis=1, keepdims=True)                    # (TM, 1)
    d_min = 1.0 - smax                                            # (TM, 1)
    t = 1.0 / (d_min + 1e-5)                                      # exact per-row recip
    a = t * inv_band_width                                        # (TM, 1)
    c = (1.0 - d_min * t) * inv_band_width                        # (TM, 1)
    w = jnp.exp((sim - smax) * a + c)                             # (TM, HW)  EUP

    # ---- CX normalization: per-row reciprocal (EUP) * HW^2 multiply ----
    row_sum = jnp.sum(w, axis=1, keepdims=True)                   # (TM, 1), >= ~1
    scale = (1.0 - weight_sp) * pl.reciprocal(row_sum, approx=True)

    # ---- bilateral combination (spatial part precomputed & pre-weighted) ----
    cx_comb = w * scale + csp                                     # (TM, HW)
    k_max = jnp.max(cx_comb, axis=1, keepdims=True)               # (TM, 1)

    # partial sum of per-row maxes for this (batch, row-tile) grid step
    out_ref[...] = jnp.sum(k_max, axis=0, keepdims=True)          # (1, 1)


# ---------------------------------------------------------------------------
# Tile selection: largest row tile (multiple of 8, divides HW) within a VMEM budget.
# ---------------------------------------------------------------------------
def _choose_row_tile(hw, c, vmem_budget_bytes=26 * 1024 * 1024):
    # Live f32 VMEM per grid step: ~2x double-buffered (TM,HW) csp block
    # + ~3 (TM,HW) temporaries (sim, w, cx_comb) + 2x (C,HW) y block + small x block.
    y_bytes = 2 * c * hw * 4
    per_row_bytes = 6 * hw * 4
    cap = (vmem_budget_bytes - y_bytes) // per_row_bytes
    cap = max(8, min(512, int(cap)))
    cap -= cap % 8
    cap = max(cap, 8)
    if cap >= hw:
        return hw                       # single full-HW row block (small inputs)
    for tm in range(cap, 7, -1):
        if hw % tm == 0 and tm % 8 == 0:
            return tm
    # TODO(synk): ragged HW with no multiple-of-8 divisor <= cap falls back to a single
    # full-HW row block (always layout-legal, may exceed the VMEM budget for huge HW).
    return hw


def _cobi_partial_sums(x_feat, y_feat, csp_w, weight_sp, band_width, tm):
    """Returns (N, R) partial sums of per-row maxes of the combined CX matrix."""
    N, HW, C = x_feat.shape
    R = HW // tm

    kernel = functools.partial(
        _cobi_kernel,
        weight_sp=float(weight_sp),
        inv_band_width=float(1.0 / band_width),
    )

    out = pl.pallas_call(
        kernel,
        out_shape=jax.ShapeDtypeStruct((N, R, 1, 1), jnp.float32),
        grid=(N, R),
        in_specs=[
            pl.BlockSpec((None, tm, C), lambda n, r: (n, r, 0)),   # x row tile
            pl.BlockSpec((None, C, HW), lambda n, r: (n, 0, 0)),   # y (full, resident per n)
            pl.BlockSpec((tm, HW), lambda n, r: (r, 0)),           # weight_sp * cx_sp rows
        ],
        out_specs=pl.BlockSpec((None, None, 1, 1), lambda n, r: (n, r, 0, 0)),
        compiler_params=pltpu.CompilerParams(
            dimension_semantics=("parallel", "parallel"),          # both TCs usable on v7x
            vmem_limit_bytes=32 * 1024 * 1024,
        ),
    )(x_feat, y_feat, csp_w)
    return out[:, :, 0, 0]  # (N, R)


# ---------------------------------------------------------------------------
# Batch-invariant spatial CX term (hoisted out of the kernel; computed once per call).
# ---------------------------------------------------------------------------
def _weighted_spatial_cx(H, W, weight_sp, band_width):
    rows = jnp.arange(H, dtype=jnp.float32) / (H + 1)
    cols = jnp.arange(W, dtype=jnp.float32) / (W + 1)
    gr = jnp.broadcast_to(rows[:, None], (H, W)).reshape(-1)      # (HW,)
    gc = jnp.broadcast_to(cols[None, :], (H, W)).reshape(-1)      # (HW,)
    dr = gr[:, None] - gr[None, :]
    dc = gc[:, None] - gc[None, :]
    dist = dr * dr + dc * dc                                      # (HW, HW), >= 0
    d_min = jnp.min(dist, axis=1, keepdims=True)                  # == 0 on the diagonal
    d_tilde = dist / (d_min + 1e-5)
    w = jnp.exp((1.0 - d_tilde) / band_width)
    cx_sp = w / jnp.sum(w, axis=1, keepdims=True)
    return (weight_sp * cx_sp).astype(jnp.float32)                # pre-weighted


# ---------------------------------------------------------------------------
# Functional: JAX port of contextual_loss.functional.contextual_bilateral_loss
# (loss_type='cosine').
# ---------------------------------------------------------------------------
@functools.partial(jax.jit, static_argnums=(2, 3))
def contextual_bilateral_loss(x, y, weight_sp=0.1, band_width=1.0):
    assert x.shape == y.shape, "input tensor must have the same size."
    N, C, H, W = x.shape
    x = x.astype(jnp.float32)
    y = y.astype(jnp.float32)

    # --- cosine feature preparation (compute_cosine_distance preamble) ---
    y_mu = jnp.mean(y, axis=(0, 2, 3), keepdims=True)
    x_c = x - y_mu
    y_c = y - y_mu
    # F.normalize(..., p=2, dim=1, eps=1e-12)
    x_n = x_c / jnp.maximum(jnp.sqrt(jnp.sum(x_c * x_c, axis=1, keepdims=True)), 1e-12)
    y_n = y_c / jnp.maximum(jnp.sqrt(jnp.sum(y_c * y_c, axis=1, keepdims=True)), 1e-12)

    HW = H * W
    # The feature matmul stays in f32 (K = C is tiny; MXU is not the binding unit).
    x_feat = jnp.transpose(x_n.reshape(N, C, HW), (0, 2, 1))   # (N, HW, C)
    y_feat = y_n.reshape(N, C, HW)                             # (N, C, HW)

    # --- spatial branch: batch-invariant, computed once and pre-weighted ---
    csp_w = _weighted_spatial_cx(H, W, float(weight_sp), float(band_width))  # (HW, HW)

    tm = _choose_row_tile(HW, C)
    partials = _cobi_partial_sums(x_feat, y_feat, csp_w,
                                  float(weight_sp), float(band_width), tm)   # (N, R)
    cx_per_batch = jnp.sum(partials, axis=1) / float(HW)                     # (N,)
    return jnp.mean(-jnp.log(cx_per_batch + 1e-5))


class ContextualBilateralLoss:
    """JAX/Pallas equivalent of the PyTorch ContextualBilateralLoss (use_vgg=False)."""

    LOSS_TYPES = ("cosine", "l1", "l2")

    def __init__(self, weight_sp: float = 0.1, band_width: float = 0.5,
                 loss_type: str = "cosine", use_vgg: bool = False,
                 vgg_layer: str = "relu3_4"):
        assert band_width > 0, "band_width parameter must be positive."
        assert loss_type in self.LOSS_TYPES
        self.weight_sp = weight_sp
        self.band_width = band_width
        self.use_vgg = use_vgg
        # TODO(synk): VGG19 feature-extraction path (use_vgg=True) not implemented — it
        # requires pretrained ImageNet weights; the default forward (use_vgg=False) is exact.

    def __call__(self, x, y):
        # Faithful to the reference: 3rd positional arg of the functional is weight_sp.
        return contextual_bilateral_loss(x, y, self.band_width)


if __name__ == "__main__":
    key = jax.random.PRNGKey(0)
    kx, ky = jax.random.split(key)
    N, C, H, W = 2, 4, 16, 16
    x = jax.random.uniform(kx, (N, C, H, W), dtype=jnp.float32)
    y = jax.random.uniform(ky, (N, C, H, W), dtype=jnp.float32)

    loss_fn = ContextualBilateralLoss()
    loss = jax.block_until_ready(loss_fn(x, y))
    assert loss.shape == () and bool(jnp.isfinite(loss))

    # Also exercise the multi-row-tile accumulation path (HW=1024 -> 2 row tiles of 512).
    kx2, ky2 = jax.random.split(ky)
    x2 = jax.random.uniform(kx2, (1, 4, 32, 32), dtype=jnp.float32)
    y2 = jax.random.uniform(ky2, (1, 4, 32, 32), dtype=jnp.float32)
    loss2 = jax.block_until_ready(loss_fn(x2, y2))
    assert loss2.shape == () and bool(jnp.isfinite(loss2))

    print("KERNEL_OK")
</pallas_src>

<mosaic_0001>
module attributes {stable_mosaic.version = 11 : i64} {
  func.func @_cobi_kernel(%arg0: i32, %arg1: i32, %arg2: memref<1x256x4xf32, #tpu.memory_space<vmem>>, %arg3: memref<1x4x256xf32, #tpu.memory_space<vmem>>, %arg4: memref<256x256xf32, #tpu.memory_space<vmem>>, %arg5: memref<1x1x1x1xf32, #tpu.memory_space<vmem>>) attributes {dimension_semantics = [#tpu.dimension_semantics<parallel>, #tpu.dimension_semantics<parallel>], iteration_bounds = array<i64: 2, 1>, scalar_prefetch = 0 : i64, scratch_operands = 0 : i64, tpu.core_type = #tpu.core_type<tc>, window_params = [{transform_indices = @transform_0, window_bounds = array<i64: 1, 256, 4>}, {transform_indices = @transform_1, window_bounds = array<i64: 1, 4, 256>}, {transform_indices = @transform_2, window_bounds = array<i64: 256, 256>}, {transform_indices = @transform_3, window_bounds = array<i64: 1, 1, 1, 1>}]} {
    %c0 = arith.constant 0 : index
    %c0_0 = arith.constant 0 : index
    %c0_1 = arith.constant 0 : index
    %0 = vector.load %arg2[%c0, %c0_0, %c0_1] : memref<1x256x4xf32, #tpu.memory_space<vmem>>, vector<1x256x4xf32>
    %1 = vector.shape_cast %0 : vector<1x256x4xf32> to vector<256x4xf32>
    %c0_2 = arith.constant 0 : index
    %c0_3 = arith.constant 0 : index
    %c0_4 = arith.constant 0 : index
    %2 = vector.load %arg3[%c0_2, %c0_3, %c0_4] : memref<1x4x256xf32, #tpu.memory_space<vmem>>, vector<1x4x256xf32>
    %3 = vector.shape_cast %2 : vector<1x4x256xf32> to vector<4x256xf32>
    %c0_5 = arith.constant 0 : index
    %c0_6 = arith.constant 0 : index
    %4 = vector.load %arg4[%c0_5, %c0_6] : memref<256x256xf32, #tpu.memory_space<vmem>>, vector<256x256xf32>
    %cst = arith.constant dense<0.000000e+00> : vector<256x256xf32>
    %5 = tpu.matmul %1, %3, %cst {dimension_numbers = #tpu.dot_dimension_numbers<[1], [0], [0], [1], [0, 0, 1, 1], [], []>} : vector<256x4xf32>, vector<4x256xf32>, vector<256x256xf32> -> vector<256x256xf32>
    %cst_7 = arith.constant dense<0xFF800000> : vector<256xf32>
    %6 = vector.multi_reduction <maximumf>, %5, %cst_7 [1] : vector<256x256xf32> to vector<256xf32>
    %7 = vector.shape_cast %6 : vector<256xf32> to vector<256x1xf32>
    %cst_8 = arith.constant 1.000000e+00 : f32
    %8 = vector.broadcast %cst_8 : f32 to vector<256x1xf32>
    %9 = arith.subf %8, %7 : vector<256x1xf32>
    %cst_9 = arith.constant 9.99999974E-6 : f32
    %10 = vector.broadcast %cst_9 : f32 to vector<256x1xf32>
    %11 = arith.addf %9, %10 : vector<256x1xf32>
    %cst_10 = arith.constant 1.000000e+00 : f32
    %12 = vector.broadcast %cst_10 : f32 to vector<256x1xf32>
    %13 = arith.divf %12, %11 : vector<256x1xf32>
    %cst_11 = arith.constant 1.000000e+00 : f32
    %14 = vector.broadcast %cst_11 : f32 to vector<256x1xf32>
    %15 = arith.mulf %13, %14 : vector<256x1xf32>
    %16 = arith.mulf %9, %13 : vector<256x1xf32>
    %cst_12 = arith.constant 1.000000e+00 : f32
    %17 = vector.broadcast %cst_12 : f32 to vector<256x1xf32>
    %18 = arith.subf %17, %16 : vector<256x1xf32>
    %cst_13 = arith.constant 1.000000e+00 : f32
    %19 = vector.broadcast %cst_13 : f32 to vector<256x1xf32>
    %20 = arith.mulf %18, %19 : vector<256x1xf32>
    %21 = vector.broadcast %7 : vector<256x1xf32> to vector<256x256xf32>
    %22 = arith.subf %5, %21 : vector<256x256xf32>
    %23 = vector.broadcast %15 : vector<256x1xf32> to vector<256x256xf32>
    %24 = arith.mulf %22, %23 : vector<256x256xf32>
    %25 = vector.broadcast %20 : vector<256x1xf32> to vector<256x256xf32>
    %26 = arith.addf %24, %25 : vector<256x256xf32>
    %27 = math.exp %26 : vector<256x256xf32>
    %cst_14 = arith.constant dense<0.000000e+00> : vector<256xf32>
    %28 = vector.multi_reduction <add>, %27, %cst_14 [1] : vector<256x256xf32> to vector<256xf32>
    %29 = vector.shape_cast %28 : vector<256xf32> to vector<256x1xf32>
    %30 = tpu.reciprocal %29 {approx = true} : vector<256x1xf32> -> vector<256x1xf32>
    %cst_15 = arith.constant 5.000000e-01 : f32
    %31 = vector.broadcast %cst_15 : f32 to vector<256x1xf32>
    %32 = arith.mulf %31, %30 : vector<256x1xf32>
    %33 = vector.broadcast %32 : vector<256x1xf32> to vector<256x256xf32>
    %34 = arith.mulf %27, %33 : vector<256x256xf32>
    %35 = arith.addf %34, %4 : vector<256x256xf32>
    %cst_16 = arith.constant dense<0xFF800000> : vector<256xf32>
    %36 = vector.multi_reduction <maximumf>, %35, %cst_16 [1] : vector<256x256xf32> to vector<256xf32>
    %37 = vector.shape_cast %36 : vector<256xf32> to vector<256x1xf32>
    %cst_17 = arith.constant dense<0.000000e+00> : vector<1xf32>
    %38 = vector.multi_reduction <add>, %37, %cst_17 [0] : vector<256x1xf32> to vector<1xf32>
    %39 = vector.shape_cast %38 : vector<1xf32> to vector<1x1xf32>
    %c0_18 = arith.constant 0 : index
    %c0_19 = arith.constant 0 : index
    %c0_20 = arith.constant 0 : index
    %c0_21 = arith.constant 0 : index
    %40 = vector.load %arg5[%c0_18, %c0_19, %c0_20, %c0_21] : memref<1x1x1x1xf32, #tpu.memory_space<vmem>>, vector<1x1x1x1xf32>
    %41 = vector.shape_cast %40 : vector<1x1x1x1xf32> to vector<1x1xf32>
    %42 = vector.shape_cast %39 : vector<1x1xf32> to vector<1x1x1x1xf32>
    tpu.vector_store %arg5[%c0_18, %c0_19, %c0_20, %c0_21], %42 {strides = array<i32>} : memref<1x1x1x1xf32, #tpu.memory_space<vmem>>, vector<1x1x1x1xf32>,
    return
  }
  func.func @transform_0(%arg0: i32, %arg1: i32) -> (i32, i32, i32) {
    %c0_i32 = arith.constant 0 : i32
    %c0_i32_0 = arith.constant 0 : i32
    return %arg0, %arg1, %c0_i32 : i32, i32, i32
  }
  func.func @transform_1(%arg0: i32, %arg1: i32) -> (i32, i32, i32) {
    %c0_i32 = arith.constant 0 : i32
    %c0_i32_0 = arith.constant 0 : i32
    %c0_i32_1 = arith.constant 0 : i32
    return %arg0, %c0_i32, %c0_i32_0 : i32, i32, i32
  }
  func.func @transform_2(%arg0: i32, %arg1: i32) -> (i32, i32) {
    %c0_i32 = arith.constant 0 : i32
    %c0_i32_0 = arith.constant 0 : i32
    return %arg1, %c0_i32 : i32, i32
  }
  func.func @transform_3(%arg0: i32, %arg1: i32) -> (i32, i32, i32, i32) {
    %c0_i32 = arith.constant 0 : i32
    %c0_i32_0 = arith.constant 0 : i32
    %c0_i32_1 = arith.constant 0 : i32
    return %arg0, %arg1, %c0_i32, %c0_i32_0 : i32, i32, i32, i32
  }
}

</mosaic_0001>

<bundles_post_ra>
// kernel: sub.39
= control target key start
LH: loop header
LB: loop body
LE: loop exit
PB: predicated region body
PF: predicated region fallthrough
CT: control target
= control target key end

     0   :  { %s7_s6 = smov 3  ;;  %s21_s9 = smov 3  ;;  %vm4_vm0 = vcmask 130048   ;;  %vm11_vm1 = vcmask 1048448   ;;  %vm18_vm2 = vcmask 917248   ;;  %vm25_vm3 = vcmask 786048   ;;  %s119_s0 = inlined_call_operand.vmem [shape: f32[16,16], index: 0, kind: input, shape index: {}]   ;;  %s120_s1 = inlined_call_operand.vmem [shape: f32[256], index: 1, kind: output, shape index: {}]  }
   0x1   :  { %v61_v0 = vld [vmem:[%s119_s0 + $0x7] ss:$8 sm:%s7_s6]   ;;  %s75_s10 = smov 112   ;;  %v63_v1 = vld [vmem:[%s119_s0 + $0x5] ss:$8 sm:%s21_s9]   ;;  %s14_s13 = smov 3 }
   0x2   :  { %9 = vrot.lane.b32.xlu0 %v61_v0, %s75_s10  ;;  %s76_s14 = smov 80   ;;  %v62_v2 = vld [vmem:[%s119_s0 + $0x6] ss:$8 sm:%s14_s13]   ;;  %s28_s17 = smov 3  ;;  %vm32_vm4 = vcmask 654848   ;;  %vm39_vm5 = vcmask 523648  }
   0x3   :  { %23 = vrot.lane.b32.xlu1 %v63_v1, %s76_s14  ;;  %v64_v3 = vld [vmem:[%s119_s0 + $0x4] ss:$8 sm:%s28_s17]   ;;  %s35_s20 = smov 3  ;;  %s42_s21 = smov 3  ;;  %vm46_vm6 = vcmask 392448   ;;  %vm53_vm7 = vcmask 261248  }
   0x4   :  { %s77_s22 = smov 96   ;;  %s78_s23 = smov 64   ;;  %v65_v4 = vld [vmem:[%s119_s0 + $0x3] ss:$8 sm:%s35_s20]   ;;  %v66_v5 = vld [vmem:[%s119_s0 + $0x2] ss:$8 sm:%s42_s21]  }
   0x5   :  { %s2_s26 = smov 3  ;;  %s49_s29 = smov 3 }
   0x6   :  { %16 = vrot.lane.b32.xlu0 %v62_v2, %s77_s22  ;;  %v3_v6 = vld [vmem:[%s119_s0] ss:$8 sm:%s2_s26]   ;;  %s79_s3 = smov 48   ;;  %s80_s4 = smov 32  }
   0x7   :  { %30 = vrot.lane.b32.xlu1 %v64_v3, %s78_s23  ;;  %5 = vst.msk [vmem:[#allocation0] sm:$0x3] %vm4_vm0, %v3_v6   ;;  %v67_v7 = vld [vmem:[%s119_s0 + $0x1] ss:$8 sm:%s49_s29]   ;;  %s81_s0 = smov 16  }
   0xa   :  { %37 = vrot.lane.b32.xlu0 %v65_v4, %s79_s3 }
   0xb   :  { %44 = vrot.lane.b32.xlu1 %v66_v5, %s80_s4 }
   0xe   :  { %51 = vrot.lane.b32.xlu0 %v67_v7, %s81_s0 }
  0x74   :  { %v10_v8 = vpop.permute.xlu0 %9  }
  0x75   :  { %12 = vst.msk [vmem:[#allocation0] sm:$0x3] %vm11_vm1, %v10_v8   ;;  %v24_v9 = vpop.permute.xlu1 %23  }
  0x78   :  { %v17_v10 = vpop.permute.xlu0 %16  }
  0x79   :  { %19 = vst.msk [vmem:[#allocation0] sm:$0x3] %vm18_vm2, %v17_v10   ;;  %v31_v11 = vpop.permute.xlu1 %30  }
  0x7a   :  { %26 = vst.msk [vmem:[#allocation0] sm:$0x3] %vm25_vm3, %v24_v9  }
  0x7b   :  { %33 = vst.msk [vmem:[#allocation0] sm:$0x3] %vm32_vm4, %v31_v11  }
  0x7c   :  { %v38_v12 = vpop.permute.xlu0 %37  }
  0x7d   :  { %40 = vst.msk [vmem:[#allocation0] sm:$0x3] %vm39_vm5, %v38_v12   ;;  %v45_v13 = vpop.permute.xlu1 %44  }
  0x7e   :  { %47 = vst.msk [vmem:[#allocation0] sm:$0x3] %vm46_vm6, %v45_v13  }
  0x80   :  { %v52_v14 = vpop.permute.xlu0 %51  }
  0x81   :  { %54 = vst.msk [vmem:[#allocation0] sm:$0x3] %vm53_vm7, %v52_v14  }
  0x88   :  { %v58_v15 = vld [vmem:[#allocation0] sm:$0x3] }
  0x89   :  { %60 = vst [vmem:[%s120_s1] sm:$0x3] %v58_v15 }

// kernel: contextual_bilateral_loss.1
= control target key start
LH: loop header
LB: loop body
LE: loop exit
PB: predicated region body
PF: predicated region fallthrough
CT: control target
= control target key end

     0   :  { %s2213_s12 = smov 0   ;;  %s2215_s13 = smov 0   ;;  %s3340_s0 = inlined_call_operand.vmem [shape: f32[2,256,4], index: 0, kind: input, shape index: {}]   ;;  %s3341_s1 = inlined_call_operand.vmem [shape: f32[2,4,256], index: 1, kind: input, shape index: {}]   ;;  %s3342_s2 = inlined_call_operand.vmem [shape: f32[256,256], index: 2, kind: input, shape index: {}]   ;;  %s3343_s3 = inlined_call_operand.vmem [shape: f32[2,1,1,1], index: 3, kind: output, shape index: {}]  }
   0x1   :  { %s2217_s14 = smov 0  }
   0x2 LB: > { %s25_s15 = sadd.s32 1, %s2186_s13  ;;  %p1841_p0 = scmp.ge.s32.totalorder %s2190_s14, 1  ;;  %s2190_s14 = sphi %s2217_s14, %s13_s14   ;;  %s2186_s13 = sphi %s2215_s13, %s3491_s13   ;;  %s2182_s12 = sphi %s2213_s12, %s3490_s12  }
   0x3   : > { %p27_p1 = scmp.ge.s32.totalorder %s25_s15, 2  ;;  %p180_p2 = scmp.lt.s32.totalorder %s2190_s14, 3 }
   0x5   : > { %s3493_s15 = smov (%p27_p1, %s25_s15), 0  ;;  %p181_p3 = pnand %p1841_p0, %p180_p2 }
   0x7   : > { %184 = sbr.rel (%p181_p3) target bundleno = 863 (0x35f), region = 32 }
   0xe   : > { %p221_p4 = scmp.lt.s32.totalorder %s2182_s12, 1  ;;  %v2192_v0 = vmov 0.0   ;;  %vm444_vm0 = vcmask 1043456   ;;  %vm347_vm1 = vcmask 31744   ;;  %vm1735_vm2 = vcmask 0  }
   0xf   : > { %513 = vmatprep.mubr.f32.mxu0 %v2192_v0  ;;  %609 = vmatprep.mubr.f32.mxu1 %v2192_v0 }
  0x10   : > { %s3495_s12 = smov (!%p221_p4, %s2182_s12), 1 }
  0x11   : > { %s1882_s16 = sshll.u32 %s3495_s12, 8  ;;  %s1883_s17 = sshll.u32 %s3495_s12, 3 }
  0x12   : > { %s2240_s20 = scalar_lea.vmem %s3340_s0, %s1882_s16  ;;  %s234_s23 = scalar_lea.vmem %s3341_s1, %s1883_s17 }
  0x13   : > { %v280_v1 = vld [vmem:[%s234_s23] sm:$0xff]  ;;  %v249_v5 = vld [vmem:[%s2240_s20 + $0x8] sm:$0xff]  ;;  %v250_v7 = vld [vmem:[%s2240_s20 + $0x10] sm:$0xff]  ;;  %s247_s16 = scalar_lea.vmem %s3343_s3, %s3495_s12 }
  0x14   : > { %v346_v2 = vcombine.high %v280_v1, %v280_v1  ;;  %v248_v3 = vld [vmem:[%s2240_s20] sm:$0xff]  ;;  %v265_v6 = vld [vmem:[%s2240_s20 + $0x88] sm:$0xff]  ;;  %v266_v8 = vld [vmem:[%s2240_s20 + $0x90] sm:$0xff] }
  0x15   : > { %v264_v4 = vld [vmem:[%s2240_s20 + $0x80] sm:$0xff]  ;;  %v251_v9 = vld [vmem:[%s2240_s20 + $0x18] sm:$0xff]  ;;  %v253_v13 = vld [vmem:[%s2240_s20 + $0x28] sm:$0xff] }
  0x16   : > { %1846 = vmatprep.subr.msk.mxu0 %vm444_vm0, %v346_v2  ;;  %1884 = vmatprep.subr.msk.mxu1 %vm444_vm0, %v346_v2  ;;  %v267_v10 = vld [vmem:[%s2240_s20 + $0x98] sm:$0xff]  ;;  %v252_v11 = vld [vmem:[%s2240_s20 + $0x20] sm:$0xff]  ;;  %v269_v14 = vld [vmem:[%s2240_s20 + $0xa8] sm:$0xff] }
  0x17   : > { %1847 = vmatpush1.msk.msra.mxu0 %vm444_vm0, %v280_v1  ;;  %1885 = vmatpush1.msk.msra.mxu1 %vm444_vm0, %v280_v1  ;;  %v268_v12 = vld [vmem:[%s2240_s20 + $0xa0] sm:$0xff]  ;;  %v254_v15 = vld [vmem:[%s2240_s20 + $0x30] sm:$0xff]  ;;  %v255_v17 = vld [vmem:[%s2240_s20 + $0x38] sm:$0xff] }
  0x18   : > { %1848 = vmatmul.mubr.msk.f32.vlgmr.msra.gmra.mrb[0].mxu0 %vm347_vm1, %v248_v3  ;;  %1864 = vmatmul.mubr.msk.f32.vlgmr.msra.gmra.mrb[0].mxu1 %vm347_vm1, %v264_v4  ;;  %v270_v16 = vld [vmem:[%s2240_s20 + $0xb0] sm:$0xff]  ;;  %v271_v18 = vld [vmem:[%s2240_s20 + $0xb8] sm:$0xff]  ;;  %v256_v19 = vld [vmem:[%s2240_s20 + $0x40] sm:$0xff] }
  0x19   : > { %519 = vmatprep.mubr.f32.mxu0 %v2192_v0  ;;  %615 = vmatprep.mubr.f32.mxu1 %v2192_v0  ;;  %v272_v20 = vld [vmem:[%s2240_s20 + $0xc0] sm:$0xff]  ;;  %v257_v21 = vld [vmem:[%s2240_s20 + $0x48] sm:$0xff]  ;;  %v258_v23 = vld [vmem:[%s2240_s20 + $0x50] sm:$0xff] }
  0x1a   : > { %v273_v22 = vld [vmem:[%s2240_s20 + $0xc8] sm:$0xff]  ;;  %v274_v24 = vld [vmem:[%s2240_s20 + $0xd0] sm:$0xff]  ;;  %v259_v25 = vld [vmem:[%s2240_s20 + $0x58] sm:$0xff] }
  0x1b   : > { %v275_v26 = vld [vmem:[%s2240_s20 + $0xd8] sm:$0xff]  ;;  %v260_v27 = vld [vmem:[%s2240_s20 + $0x60] sm:$0xff]  ;;  %v261_v29 = vld [vmem:[%s2240_s20 + $0x68] sm:$0xff] }
  0x1c   : > { %1849 = vmatmul.mubr.msk.f32.gmra.mrb[2].mxu0 %vm347_vm1, %v249_v5  ;;  %1865 = vmatmul.mubr.msk.f32.gmra.mrb[2].mxu1 %vm347_vm1, %v265_v6  ;;  %v276_v28 = vld [vmem:[%s2240_s20 + $0xe0] sm:$0xff]  ;;  %v277_v30 = vld [vmem:[%s2240_s20 + $0xe8] sm:$0xff]  ;;  %v262_v31 = vld [vmem:[%s2240_s20 + $0x70] sm:$0xff] }
  0x1d   : > { %525 = vmatprep.mubr.f32.mxu0 %v2192_v0  ;;  %621 = vmatprep.mubr.f32.mxu1 %v2192_v0  ;;  %v278_v32 = vld [vmem:[%s2240_s20 + $0xf0] sm:$0xff]  ;;  %v263_v33 = vld [vmem:[%s2240_s20 + $0x78] sm:$0xff] }
  0x1e   : > { %v279_v34 = vld [vmem:[%s2240_s20 + $0xf8] sm:$0xff] }
  0x20   : > { %1850 = vmatmul.mubr.msk.f32.gmra.mrb[4].mxu0 %vm347_vm1, %v250_v7  ;;  %1866 = vmatmul.mubr.msk.f32.gmra.mrb[4].mxu1 %vm347_vm1, %v266_v8 }
  0x21   : > { %531 = vmatprep.mubr.f32.mxu0 %v2192_v0  ;;  %627 = vmatprep.mubr.f32.mxu1 %v2192_v0 }
  0x24   : > { %1851 = vmatmul.mubr.msk.f32.gmra.mrb[6].mxu0 %vm347_vm1, %v251_v9  ;;  %1867 = vmatmul.mubr.msk.f32.gmra.mrb[6].mxu1 %vm347_vm1, %v267_v10 }
  0x25   : > { %537 = vmatprep.mubr.f32.mxu0 %v2192_v0  ;;  %633 = vmatprep.mubr.f32.mxu1 %v2192_v0 }
  0x28   : > { %1852 = vmatmul.mubr.msk.f32.gmra.mrb[8].mxu0 %vm347_vm1, %v252_v11  ;;  %1868 = vmatmul.mubr.msk.f32.gmra.mrb[8].mxu1 %vm347_vm1, %v268_v12 }
  0x29   : > { %543 = vmatprep.mubr.f32.mxu0 %v2192_v0  ;;  %639 = vmatprep.mubr.f32.mxu1 %v2192_v0 }
  0x2c   : > { %1853 = vmatmul.mubr.msk.f32.gmra.mrb[10].mxu0 %vm347_vm1, %v253_v13  ;;  %1869 = vmatmul.mubr.msk.f32.gmra.mrb[10].mxu1 %vm347_vm1, %v269_v14 }
  0x2d   : > { %549 = vmatprep.mubr.f32.mxu0 %v2192_v0  ;;  %645 = vmatprep.mubr.f32.mxu1 %v2192_v0 }
  0x30   : > { %1854 = vmatmul.mubr.msk.f32.gmra.mrb[12].mxu0 %vm347_vm1, %v254_v15  ;;  %1870 = vmatmul.mubr.msk.f32.gmra.mrb[12].mxu1 %vm347_vm1, %v270_v16 }
  0x31   : > { %555 = vmatprep.mubr.f32.mxu0 %v2192_v0  ;;  %651 = vmatprep.mubr.f32.mxu1 %v2192_v0 }
  0x34   : > { %1855 = vmatmul.mubr.msk.f32.gmra.mrb[14].mxu0 %vm347_vm1, %v255_v17  ;;  %1871 = vmatmul.mubr.msk.f32.gmra.mrb[14].mxu1 %vm347_vm1, %v271_v18 }
  0x35   : > { %561 = vmatprep.mubr.f32.mxu0 %v2192_v0  ;;  %657 = vmatprep.mubr.f32.mxu1 %v2192_v0 }
  0x38   : > { %1856 = vmatmul.mubr.msk.f32.gmra.mrb[16].mxu0 %vm347_vm1, %v256_v19  ;;  %1872 = vmatmul.mubr.msk.f32.gmra.mrb[16].mxu1 %vm347_vm1, %v272_v20 }
  0x39   : > { %567 = vmatprep.mubr.f32.mxu0 %v2192_v0  ;;  %663 = vmatprep.mubr.f32.mxu1 %v2192_v0 }
  0x3c   : > { %1857 = vmatmul.mubr.msk.f32.gmra.mrb[18].mxu0 %vm347_vm1, %v257_v21  ;;  %1873 = vmatmul.mubr.msk.f32.gmra.mrb[18].mxu1 %vm347_vm1, %v273_v22 }
  0x3d   : > { %573 = vmatprep.mubr.f32.mxu0 %v2192_v0  ;;  %669 = vmatprep.mubr.f32.mxu1 %v2192_v0 }
  0x40   : > { %1858 = vmatmul.mubr.msk.f32.gmra.mrb[20].mxu0 %vm347_vm1, %v258_v23  ;;  %1874 = vmatmul.mubr.msk.f32.gmra.mrb[20].mxu1 %vm347_vm1, %v274_v24 }
  0x41   : > { %579 = vmatprep.mubr.f32.mxu0 %v2192_v0  ;;  %675 = vmatprep.mubr.f32.mxu1 %v2192_v0 }
  0x44   : > { %1859 = vmatmul.mubr.msk.f32.gmra.mrb[22].mxu0 %vm347_vm1, %v259_v25  ;;  %1875 = vmatmul.mubr.msk.f32.gmra.mrb[22].mxu1 %vm347_vm1, %v275_v26 }
  0x45   : > { %585 = vmatprep.mubr.f32.mxu0 %v2192_v0  ;;  %681 = vmatprep.mubr.f32.mxu1 %v2192_v0 }
  0x48   : > { %1860 = vmatmul.mubr.msk.f32.gmra.mrb[24].mxu0 %vm347_vm1, %v260_v27  ;;  %1876 = vmatmul.mubr.msk.f32.gmra.mrb[24].mxu1 %vm347_vm1, %v276_v28 }
  0x49   : > { %591 = vmatprep.mubr.f32.mxu0 %v2192_v0  ;;  %687 = vmatprep.mubr.f32.mxu1 %v2192_v0 }
  0x4c   : > { %1861 = vmatmul.mubr.msk.f32.gmra.mrb[26].mxu0 %vm347_vm1, %v261_v29  ;;  %1877 = vmatmul.mubr.msk.f32.gmra.mrb[26].mxu1 %vm347_vm1, %v277_v30 }
  0x4d   : > { %597 = vmatprep.mubr.f32.mxu0 %v2192_v0  ;;  %693 = vmatprep.mubr.f32.mxu1 %v2192_v0 }
  0x50   : > { %1862 = vmatmul.mubr.msk.f32.gmra.mrb[28].mxu0 %vm347_vm1, %v262_v31  ;;  %1878 = vmatmul.mubr.msk.f32.gmra.mrb[28].mxu1 %vm347_vm1, %v278_v32 }
  0x51   : > { %603 = vmatprep.mubr.f32.mxu0 %v2192_v0  ;;  %699 = vmatprep.mubr.f32.mxu1 %v2192_v0 }
  0x54   : > { %1863 = vmatmul.mubr.msk.f32.gmra.mrb[30].mxu0 %vm347_vm1, %v263_v33  ;;  %1879 = vmatmul.mubr.msk.f32.gmra.mrb[30].mxu1 %vm347_vm1, %v279_v34 }
  0xeb   : > { %v2339_v35 = vpop.f32.mrb[0].mxu0  ;;  %v2341_v36 = vpop.f32.mrb[0].mxu1 }
  0xec   : > { %v2343_v37 = vpop.f32.mrb[1].mxu0  ;;  %v2345_v38 = vpop.f32.mrb[1].mxu1 }
  0xed   : > { %v706_v39 = vmax.f32 %v2339_v35, %v2343_v37 }
  0xef   : > { %707 = vmax.xlane.f32.xlu0 %v706_v39  ;;  %v2351_v41 = vpop.f32.mrb[2].mxu0  ;;  %v2353_v42 = vpop.f32.mrb[2].mxu1 }
  0xf0   : > { %v2355_v43 = vpop.f32.mrb[3].mxu0  ;;  %v2357_v44 = vpop.f32.mrb[3].mxu1 }
  0xf1   : > { %v709_v45 = vmax.f32 %v2351_v41, %v2355_v43 }
  0xf3   : > { %710 = vmax.xlane.f32.xlu0 %v709_v45  ;;  %v2363_v47 = vpop.f32.mrb[4].mxu0  ;;  %v2365_v48 = vpop.f32.mrb[4].mxu1 }
  0xf4   : > { %v2367_v49 = vpop.f32.mrb[5].mxu0  ;;  %v2369_v50 = vpop.f32.mrb[5].mxu1 }
  0xf5   : > { %v712_v51 = vmax.f32 %v2363_v47, %v2367_v49 }
  0xf7   : > { %713 = vmax.xlane.f32.xlu1 %v712_v51  ;;  %v2375_v53 = vpop.f32.mrb[6].mxu0  ;;  %v2377_v54 = vpop.f32.mrb[6].mxu1 }
  0xf8   : > { %3393 = vst [vmem:[#allocation2_spill] sm:$0xff] %v2377_v54  ;;  %v2379_v55 = vpop.f32.mrb[7].mxu0  ;;  %v2381_v56 = vpop.f32.mrb[7].mxu1 }
  0xf9   : > { %3394 = vst [vmem:[#allocation3_spill] sm:$0xff] %v2381_v56  ;;  %v715_v57 = vmax.f32 %v2375_v53, %v2379_v55 }
  0xfb   : > { %716 = vmax.xlane.f32.xlu1 %v715_v57  ;;  %v2387_v59 = vpop.f32.mrb[8].mxu0  ;;  %v2389_v60 = vpop.f32.mrb[8].mxu1 }
  0xfc   : > { %v2391_v61 = vpop.f32.mrb[9].mxu0  ;;  %v2393_v62 = vpop.f32.mrb[9].mxu1 }
  0xfd   : > { %3395 = vst [vmem:[#allocation4_spill] sm:$0xff] %v2393_v62  ;;  %v718_v63 = vmax.f32 %v2387_v59, %v2391_v61 }
  0xff   : > { %719 = vmax.xlane.f32.xlu0 %v718_v63  ;;  %v2399_v1 = vpop.f32.mrb[10].mxu0  ;;  %v2401_v2 = vpop.f32.mrb[10].mxu1 }
 0x100   : > { %3396 = vst [vmem:[#allocation5_spill] sm:$0xff] %v2401_v2  ;;  %v2403_v3 = vpop.f32.mrb[11].mxu0  ;;  %v2405_v4 = vpop.f32.mrb[11].mxu1 }
 0x101   : > { %3397 = vst [vmem:[#allocation6_spill] sm:$0xff] %v2405_v4  ;;  %v721_v5 = vmax.f32 %v2399_v1, %v2403_v3 }
 0x103   : > { %722 = vmax.xlane.f32.xlu1 %v721_v5  ;;  %v2411_v7 = vpop.f32.mrb[12].mxu0  ;;  %v2413_v8 = vpop.f32.mrb[12].mxu1 }
 0x104   : > { %3398 = vst [vmem:[#allocation7_spill] sm:$0xff] %v2413_v8  ;;  %v2415_v9 = vpop.f32.mrb[13].mxu0  ;;  %v2417_v10 = vpop.f32.mrb[13].mxu1 }
 0x105   : > { %3399 = vst [vmem:[#allocation8_spill] sm:$0xff] %v2417_v10  ;;  %v724_v11 = vmax.f32 %v2411_v7, %v2415_v9 }
 0x107   : > { %725 = vmax.xlane.f32.xlu0 %v724_v11  ;;  %v2423_v13 = vpop.f32.mrb[14].mxu0  ;;  %v2425_v14 = vpop.f32.mrb[14].mxu1 }
 0x108   : > { %3400 = vst [vmem:[#allocation9_spill] sm:$0xff] %v2425_v14  ;;  %v2427_v15 = vpop.f32.mrb[15].mxu0  ;;  %v2429_v16 = vpop.f32.mrb[15].mxu1 }
 0x109   : > { %3401 = vst [vmem:[#allocation10_spill] sm:$0xff] %v2429_v16  ;;  %v727_v17 = vmax.f32 %v2423_v13, %v2427_v15 }
 0x10b   : > { %728 = vmax.xlane.f32.xlu1 %v727_v17  ;;  %v2435_v19 = vpop.f32.mrb[16].mxu0  ;;  %v2437_v20 = vpop.f32.mrb[16].mxu1 }
 0x10c   : > { %3402 = vst [vmem:[#allocation11_spill] sm:$0xff] %v2437_v20  ;;  %v2439_v21 = vpop.f32.mrb[17].mxu0  ;;  %v2441_v22 = vpop.f32.mrb[17].mxu1 }
 0x10d   : > { %3403 = vst [vmem:[#allocation12_spill] sm:$0xff] %v2441_v22  ;;  %v730_v23 = vmax.f32 %v2435_v19, %v2439_v21  ;;  %v778_v24 = vmax.f32 %v2437_v20, %v2441_v22  ;;  %v3418_v22 = vmax.f32 %v2341_v36, %v2345_v38 }
 0x10f   : > { %731 = vmax.xlane.f32.xlu0 %v730_v23  ;;  %v2447_v25 = vpop.f32.mrb[18].mxu0  ;;  %v2449_v26 = vpop.f32.mrb[18].mxu1 }
 0x110   : > { %3404 = vst [vmem:[#allocation13_spill] sm:$0xff] %v2449_v26  ;;  %v2451_v27 = vpop.f32.mrb[19].mxu0  ;;  %v2453_v28 = vpop.f32.mrb[19].mxu1 }
 0x111   : > { %3405 = vst [vmem:[#allocation14_spill] sm:$0xff] %v2453_v28  ;;  %v733_v29 = vmax.f32 %v2447_v25, %v2451_v27  ;;  %v781_v30 = vmax.f32 %v2449_v26, %v2453_v28 }
 0x113   : > { %734 = vmax.xlane.f32.xlu1 %v733_v29  ;;  %v2459_v31 = vpop.f32.mrb[20].mxu0  ;;  %v2461_v32 = vpop.f32.mrb[20].mxu1 }
 0x114   : > { %3406 = vst [vmem:[#allocation15_spill] sm:$0xff] %v2461_v32  ;;  %v2463_v33 = vpop.f32.mrb[21].mxu0  ;;  %v2465_v34 = vpop.f32.mrb[21].mxu1 }
 0x115   : > { %3407 = vst [vmem:[#allocation16_spill] sm:$0xff] %v2465_v34  ;;  %v736_v39 = vmax.f32 %v2459_v31, %v2463_v33  ;;  %v784_v45 = vmax.f32 %v2461_v32, %v2465_v34 }
 0x117   : > { %737 = vmax.xlane.f32.xlu0 %v736_v39  ;;  %v2471_v51 = vpop.f32.mrb[22].mxu0  ;;  %v2473_v57 = vpop.f32.mrb[22].mxu1 }
 0x118   : > { %3408 = vst [vmem:[#allocation17_spill] sm:$0xff] %v2473_v57  ;;  %v2475_v63 = vpop.f32.mrb[23].mxu0  ;;  %v2477_v5 = vpop.f32.mrb[23].mxu1 }
 0x119   : > { %3409 = vst [vmem:[#allocation18_spill] sm:$0xff] %v2477_v5  ;;  %v739_v11 = vmax.f32 %v2471_v51, %v2475_v63  ;;  %v787_v17 = vmax.f32 %v2473_v57, %v2477_v5 }
 0x11b   : > { %740 = vmax.xlane.f32.xlu1 %v739_v11  ;;  %v2483_v23 = vpop.f32.mrb[24].mxu0  ;;  %v2485_v29 = vpop.f32.mrb[24].mxu1 }
 0x11c   : > { %3410 = vst [vmem:[#allocation19_spill] sm:$0xff] %v2485_v29  ;;  %v2487_v39 = vpop.f32.mrb[25].mxu0  ;;  %v2489_v18 = vpop.f32.mrb[25].mxu1 }
 0x11d   : > { %3411 = vst [vmem:[#allocation20_spill] sm:$0xff] %v2489_v18  ;;  %v742_v6 = vmax.f32 %v2483_v23, %v2487_v39  ;;  %v790_v12 = vmax.f32 %v2485_v29, %v2489_v18 }
 0x11f   : > { %743 = vmax.xlane.f32.xlu0 %v742_v6  ;;  %v2495_v58 = vpop.f32.mrb[26].mxu0  ;;  %v2497_v0 = vpop.f32.mrb[26].mxu1 }
 0x120   : > { %3412 = vst [vmem:[#allocation21_spill] sm:$0xff] %v2497_v0  ;;  %v2499_v11 = vpop.f32.mrb[27].mxu0  ;;  %v2501_v46 = vpop.f32.mrb[27].mxu1 }
 0x121   : > { %3413 = vst [vmem:[#allocation22_spill] sm:$0xff] %v2501_v46  ;;  %v745_v52 = vmax.f32 %v2495_v58, %v2499_v11  ;;  %v793_v40 = vmax.f32 %v2497_v0, %v2501_v46 }
 0x123   : > { %746 = vmax.xlane.f32.xlu1 %v745_v52  ;;  %v2507_v5 = vpop.f32.mrb[28].mxu0  ;;  %v2509_v57 = vpop.f32.mrb[28].mxu1 }
 0x124   : > { %3414 = vst [vmem:[#allocation23_spill] sm:$0xff] %v2509_v57  ;;  %v2511_v6 = vpop.f32.mrb[29].mxu0  ;;  %v2513_v18 = vpop.f32.mrb[29].mxu1 }
 0x125   : > { %3415 = vst [vmem:[#allocation24_spill] sm:$0xff] %v2513_v18  ;;  %v748_v29 = vmax.f32 %v2507_v5, %v2511_v6  ;;  %v796_v28 = vmax.f32 %v2509_v57, %v2513_v18  ;;  %v3420_v18 = vmax.f32 %v2353_v42, %v2357_v44  ;;  %v3421_v57 = vmax.f32 %v2389_v60, %v2393_v62 }
 0x127   : > { %749 = vmax.xlane.f32.xlu0 %v748_v29  ;;  %v2519_v26 = vpop.f32.mrb[30].mxu0  ;;  %v2521_v34 = vpop.f32.mrb[30].mxu1  ;;  %v3419_v29 = vmax.f32 %v2365_v48, %v2369_v50 }
 0x128   : > { %3416 = vst [vmem:[#allocation25_spill] sm:$0xff] %v2521_v34  ;;  %v2523_v52 = vpop.f32.mrb[31].mxu0  ;;  %v2525_v46 = vpop.f32.mrb[31].mxu1 }
 0x129   : > { %3417 = vst [vmem:[#allocation26_spill] sm:$0xff] %v2525_v46  ;;  %v751_v0 = vmax.f32 %v2519_v26, %v2523_v52  ;;  %v799_v32 = vmax.f32 %v2521_v34, %v2525_v46  ;;  %v3422_v46 = vmax.f32 %v2377_v54, %v2381_v56 }
 0x12b   : > { %755 = vmax.xlane.f32.xlu0 %v3418_v22  ;;  %752 = vmax.xlane.f32.xlu1 %v751_v0  ;;  %v3423_v22 = vmax.f32 %v2413_v8, %v2417_v10  ;;  %v3424_v0 = vmax.f32 %v2401_v2, %v2405_v4 }
 0x12f   : > { %761 = vmax.xlane.f32.xlu0 %v3419_v29  ;;  %758 = vmax.xlane.f32.xlu1 %v3420_v18  ;;  %v3425_v18 = vmax.f32 %v2425_v14, %v2429_v16 }
 0x133   : > { %767 = vmax.xlane.f32.xlu0 %v3421_v57  ;;  %764 = vmax.xlane.f32.xlu1 %v3422_v46 }
 0x137   : > { %773 = vmax.xlane.f32.xlu0 %v3423_v22  ;;  %770 = vmax.xlane.f32.xlu1 %v3424_v0 }
 0x13b   : > { %779 = vmax.xlane.f32.xlu0 %v778_v24  ;;  %776 = vmax.xlane.f32.xlu1 %v3425_v18 }
 0x13f   : > { %785 = vmax.xlane.f32.xlu0 %v784_v45  ;;  %782 = vmax.xlane.f32.xlu1 %v781_v30 }
 0x143   : > { %791 = vmax.xlane.f32.xlu0 %v790_v12  ;;  %788 = vmax.xlane.f32.xlu1 %v787_v17 }
 0x147   : > { %797 = vmax.xlane.f32.xlu0 %v796_v28  ;;  %794 = vmax.xlane.f32.xlu1 %v793_v40 }
 0x14b   : > { %800 = vmax.xlane.f32.xlu1 %v799_v32 }
 0x17c   : > { %v708_v46 = vpop.xlane.xlu0 %707 }
 0x17d   : > { %v802_v57 = vsub.f32 1.0, %v708_v46  ;;  %v994_v40 = vsub.f32 %v2339_v35, %v708_v46  ;;  %v995_v28 = vsub.f32 %v2343_v37, %v708_v46 }
 0x17f   : > { %v834_v29 = vadd.f32 1e-05, %v802_v57 }
 0x180   : > { %v711_v22 = vpop.xlane.xlu0 %710 }
 0x181   : > { %1912 = vrcp.f32 %v834_v29  ;;  %v803_v34 = vsub.f32 1.0, %v711_v22  ;;  %v996_v10 = vsub.f32 %v2351_v41, %v711_v22 }
 0x183   : > { %v835_v20 = vadd.f32 1e-05, %v803_v34 }
 0x184   : > { %v714_v0 = vpop.xlane.xlu1 %713 }
 0x185   : > { %1914 = vrcp.f32 %v835_v20  ;;  %v804_v24 = vsub.f32 1.0, %v714_v0  ;;  %v999_v41 = vsub.f32 %v2367_v49, %v714_v0 }
 0x187   : > { %v836_v4 = vadd.f32 1e-05, %v804_v24 }
 0x188   : > { %v717_v16 = vpop.xlane.xlu1 %716 }
 0x189   : > { %1916 = vrcp.f32 %v836_v4  ;;  %v805_v45 = vsub.f32 1.0, %v717_v16  ;;  %v1000_v49 = vsub.f32 %v2375_v53, %v717_v16 }
 0x18b   : > { %v1913_v30 = vpop.eup %1912  ;;  %v837_v12 = vadd.f32 1e-05, %v805_v45 }
 0x18c   : > { %v930_v17 = vmul.f32 %v1913_v30, %v802_v57  ;;  %v2557_v32 = vpop.xlane.xlu0 %719  ;;  %v1058_v14 = vmul.f32 %v1913_v30, %v994_v40  ;;  %v1059_v20 = vmul.f32 %v1913_v30, %v995_v28  ;;  %v997_v57 = vsub.f32 %v2355_v43, %v711_v22 }
 0x18d   : > { %1918 = vrcp.f32 %v837_v12  ;;  %v806_v18 = vsub.f32 1.0, %v2557_v32  ;;  %v998_v28 = vsub.f32 %v2363_v47, %v714_v0  ;;  %v1001_v0 = vsub.f32 %v2379_v55, %v717_v16 }
 0x18e   : > { %v962_v29 = vsub.f32 1.0, %v930_v17  ;;  %v1002_v55 = vsub.f32 %v2387_v59, %v2557_v32  ;;  %v1003_v16 = vsub.f32 %v2391_v61, %v2557_v32 }
 0x18f   : > { %v1915_v2 = vpop.eup %1914  ;;  %v838_v4 = vadd.f32 1e-05, %v806_v18 }
 0x190   : > { %v1122_v8 = vadd.f32 %v1058_v14, %v962_v29  ;;  %v1123_v56 = vadd.f32 %v1059_v20, %v962_v29  ;;  %v931_v54 = vmul.f32 %v1915_v2, %v803_v34  ;;  %v2562_v35 = vpop.xlane.xlu1 %722  ;;  %v1060_v37 = vmul.f32 %v1915_v2, %v996_v10 }
 0x191   : > { %1920 = vrcp.f32 %v838_v4  ;;  %v807_v46 = vsub.f32 1.0, %v2562_v35  ;;  %v1061_v40 = vmul.f32 %v1915_v2, %v997_v57 }
 0x192   : > { %v1186_v12 = vmul.f32 1.442695, %v1122_v8  ;;  %v1188_v62 = vmul.f32 1.442695, %v1123_v56  ;;  %v963_v17 = vsub.f32 1.0, %v931_v54 }
 0x193   : > { %v1917_v30 = vpop.eup %1916  ;;  %v839_v14 = vadd.f32 1e-05, %v807_v46 }
 0x194   : > { %1922 = vpow2.f32 %v1186_v12  ;;  %v1124_v43 = vadd.f32 %v1060_v37, %v963_v17  ;;  %v1125_v34 = vadd.f32 %v1061_v40, %v963_v17  ;;  %v932_v22 = vmul.f32 %v1917_v30, %v804_v24  ;;  %v2569_v10 = vpop.xlane.xlu0 %725 }
 0x195   : > { %1924 = vpow2.f32 %v1188_v62  ;;  %v1062_v29 = vmul.f32 %v1917_v30, %v998_v28  ;;  %v1063_v8 = vmul.f32 %v1917_v30, %v999_v41  ;;  %v808_v54 = vsub.f32 1.0, %v2569_v10 }
 0x196   : > { %v1190_v56 = vmul.f32 1.442695, %v1124_v43  ;;  %v1192_v2 = vmul.f32 1.442695, %v1125_v34  ;;  %v964_v20 = vsub.f32 1.0, %v932_v22  ;;  %1926 = vrcp.f32 %v839_v14 }
 0x197   : > { %v1919_v47 = vpop.eup %1918  ;;  %v840_v4 = vadd.f32 1e-05, %v808_v54 }
 0x198   : > { %1928 = vpow2.f32 %v1190_v56  ;;  %v1126_v24 = vadd.f32 %v1062_v29, %v964_v20  ;;  %v1127_v57 = vadd.f32 %v1063_v8, %v964_v20  ;;  %v933_v62 = vmul.f32 %v1919_v47, %v805_v45  ;;  %v2576_v37 = vpop.xlane.xlu1 %728 }
 0x199   : > { %1930 = vpow2.f32 %v1192_v2  ;;  %v1064_v12 = vmul.f32 %v1919_v47, %v1000_v49  ;;  %v1065_v17 = vmul.f32 %v1919_v47, %v1001_v0  ;;  %v809_v40 = vsub.f32 1.0, %v2576_v37 }
 0x19a   : > { %v1194_v30 = vmul.f32 1.442695, %v1126_v24  ;;  %v1196_v28 = vmul.f32 1.442695, %v1127_v57  ;;  %v965_v41 = vsub.f32 1.0, %v933_v62  ;;  %1932 = vrcp.f32 %v840_v4 }
 0x19b   : > { %v1921_v53 = vpop.eup %1920  ;;  %v841_v45 = vadd.f32 1e-05, %v809_v40  ;;  %v1004_v62 = vsub.f32 %v2399_v1, %v2562_v35 }
 0x19c   : > { %1934 = vpow2.f32 %v1194_v30  ;;  %v1128_v14 = vadd.f32 %v1064_v12, %v965_v41  ;;  %v1129_v43 = vadd.f32 %v1065_v17, %v965_v41  ;;  %v934_v34 = vmul.f32 %v1921_v53, %v806_v18  ;;  %v2585_v22 = vpop.xlane.xlu0 %731 }
 0x19d   : > { %1936 = vpow2.f32 %v1196_v28  ;;  %v1066_v29 = vmul.f32 %v1921_v53, %v1002_v55  ;;  %v1067_v8 = vmul.f32 %v1921_v53, %v1003_v16  ;;  %v810_v56 = vsub.f32 1.0, %v2585_v22 }
 0x19e   : > { %v2588_v2 = vpop.eup %1922  ;;  %v1198_v59 = vmul.f32 1.442695, %v1128_v14  ;;  %v1200_v20 = vmul.f32 1.442695, %v1129_v43  ;;  %v966_v47 = vsub.f32 1.0, %v934_v34  ;;  %1938 = vrcp.f32 %v841_v45 }
 0x19f   : > { %v2590_v61 = vpop.eup %1924  ;;  %v842_v32 = vadd.f32 1e-05, %v810_v56  ;;  %v1005_v12 = vsub.f32 %v2403_v3, %v2562_v35  ;;  %v1007_v3 = vsub.f32 %v2415_v9, %v2569_v10 }
 0x1a0   : > { %v1927_v49 = vpop.eup %1926  ;;  %1940 = vpow2.f32 %v1198_v59  ;;  %v1130_v18 = vadd.f32 %v1066_v29, %v966_v47  ;;  %v1131_v0 = vadd.f32 %v1067_v8, %v966_v47  ;;  %v2594_v4 = vpop.xlane.xlu1 %734  ;;  %v1314_v24 = vadd.f32 %v2590_v61, %v2588_v2 }
 0x1a1   : > { %1942 = vpow2.f32 %v1200_v20  ;;  %v935_v57 = vmul.f32 %v1927_v49, %v807_v46  ;;  %v811_v41 = vsub.f32 1.0, %v2594_v4  ;;  %v1068_v16 = vmul.f32 %v1927_v49, %v1004_v62 }
 0x1a2   : > { %v2604_v17 = vpop.eup %1928  ;;  %v1202_v30 = vmul.f32 1.442695, %v1130_v18  ;;  %v1204_v28 = vmul.f32 1.442695, %v1131_v0  ;;  %1944 = vrcp.f32 %v842_v32  ;;  %1315 = vadd.xlane.f32.xlu0 %v1314_v24  ;;  %v1069_v45 = vmul.f32 %v1927_v49, %v1005_v12 }
 0x1a3   : > { %v2607_v53 = vpop.eup %1930  ;;  %v967_v55 = vsub.f32 1.0, %v935_v57  ;;  %v1006_v46 = vsub.f32 %v2411_v7, %v2569_v10  ;;  %v843_v35 = vadd.f32 1e-05, %v811_v41 }
 0x1a4   : > { %v1933_v1 = vpop.eup %1932  ;;  %1946 = vpow2.f32 %v1202_v30  ;;  %v2615_v14 = vpop.xlane.xlu0 %737  ;;  %v1317_v43 = vadd.f32 %v2607_v53, %v2604_v17 }
 0x1a5   : > { %1948 = vpow2.f32 %v1204_v28  ;;  %v1132_v34 = vadd.f32 %v1068_v16, %v967_v55  ;;  %v1133_v29 = vadd.f32 %v1069_v45, %v967_v55  ;;  %v936_v8 = vmul.f32 %v1933_v1, %v808_v54 }
 0x1a6   : > { %v2621_v7 = vpop.eup %1934  ;;  %v1070_v59 = vmul.f32 %v1933_v1, %v1006_v46  ;;  %1950 = vrcp.f32 %v843_v35  ;;  %v812_v9 = vsub.f32 1.0, %v2615_v14  ;;  %1318 = vadd.xlane.f32.xlu1 %v1317_v43  ;;  %v1071_v18 = vmul.f32 %v1933_v1, %v1007_v3 }
 0x1a7   : > { %v2624_v20 = vpop.eup %1936  ;;  %v1206_v47 = vmul.f32 1.442695, %v1132_v34  ;;  %v1208_v32 = vmul.f32 1.442695, %v1133_v29  ;;  %v968_v49 = vsub.f32 1.0, %v936_v8  ;;  %v1008_v28 = vsub.f32 %v2423_v13, %v2576_v37 }
 0x1a8   : > { %v1939_v0 = vpop.eup %1938  ;;  %v844_v24 = vadd.f32 1e-05, %v812_v9  ;;  %v2628_v57 = vpop.xlane.xlu1 %740  ;;  %v1320_v10 = vadd.f32 %v2624_v20, %v2621_v7  ;;  %v1009_v1 = vsub.f32 %v2427_v15, %v2576_v37  ;;  %v1010_v37 = vsub.f32 %v2435_v19, %v2585_v22 }
 0x1a9   : > { %1952 = vpow2.f32 %v1206_v47  ;;  %v1134_v54 = vadd.f32 %v1070_v59, %v968_v49  ;;  %v1135_v62 = vadd.f32 %v1071_v18, %v968_v49  ;;  %v937_v12 = vmul.f32 %v1939_v0, %v809_v40 }
 0x1aa   : > { %v2634_v30 = vpop.eup %1940  ;;  %1954 = vpow2.f32 %v1208_v32  ;;  %v813_v55 = vsub.f32 1.0, %v2628_v57  ;;  %1321 = vadd.xlane.f32.xlu0 %v1320_v10  ;;  %v1072_v40 = vmul.f32 %v1939_v0, %v1008_v28  ;;  %v1073_v29 = vmul.f32 %v1939_v0, %v1009_v1 }
 0x1ab   : > { %v2639_v16 = vpop.eup %1942  ;;  %v1210_v45 = vmul.f32 1.442695, %v1134_v54  ;;  %v969_v46 = vsub.f32 1.0, %v937_v12  ;;  %1956 = vrcp.f32 %v844_v24  ;;  %v1212_v35 = vmul.f32 1.442695, %v1135_v62 }
 0x1ac   : > { %v1945_v3 = vpop.eup %1944  ;;  %v845_v43 = vadd.f32 1e-05, %v813_v55  ;;  %v2645_v34 = vpop.xlane.xlu0 %743  ;;  %v1323_v13 = vadd.f32 %v2639_v16, %v2634_v30  ;;  %v1011_v0 = vsub.f32 %v2439_v21, %v2585_v22  ;;  %v1012_v12 = vsub.f32 %v2447_v25, %v2594_v4 }
 0x1ad   : > { %v938_v8 = vmul.f32 %v1945_v3, %v810_v56  ;;  %1958 = vpow2.f32 %v1210_v45  ;;  %v1136_v15 = vadd.f32 %v1072_v40, %v969_v46  ;;  %v814_v47 = vsub.f32 1.0, %v2645_v34 }
 0x1ae   : > { %v2651_v59 = vpop.eup %1946  ;;  %1324 = vadd.xlane.f32.xlu1 %v1323_v13  ;;  %v1137_v49 = vadd.f32 %v1073_v29, %v969_v46  ;;  %1960 = vrcp.f32 %v845_v43  ;;  %v1074_v56 = vmul.f32 %v1945_v3, %v1010_v37  ;;  %v1013_v21 = vsub.f32 %v2451_v27, %v2594_v4 }
 0x1af   : > { %v2656_v32 = vpop.eup %1948  ;;  %v970_v18 = vsub.f32 1.0, %v938_v8  ;;  %1962 = vpow2.f32 %v1212_v35  ;;  %v846_v10 = vadd.f32 1e-05, %v814_v47  ;;  %v1214_v22 = vmul.f32 1.442695, %v1136_v15 }
 0x1b0   : > { %v1951_v24 = vpop.eup %1950  ;;  %v2662_v54 = vpop.xlane.xlu1 %746  ;;  %v1326_v19 = vadd.f32 %v2656_v32, %v2651_v59  ;;  %v1075_v28 = vmul.f32 %v1945_v3, %v1011_v0  ;;  %v1014_v40 = vsub.f32 %v2459_v31, %v2615_v14  ;;  %v1216_v43 = vmul.f32 1.442695, %v1137_v49 }
 0x1b1   : > { %v939_v62 = vmul.f32 %v1951_v24, %v811_v41  ;;  %v1138_v45 = vadd.f32 %v1074_v56, %v970_v18  ;;  %v815_v46 = vsub.f32 1.0, %v2662_v54  ;;  %v1015_v41 = vsub.f32 %v2463_v33, %v2615_v14 }
 0x1b2   : > { %1327 = vadd.xlane.f32.xlu0 %v1326_v19  ;;  %1964 = vrcp.f32 %v846_v10  ;;  %v1139_v27 = vadd.f32 %v1075_v28, %v970_v18  ;;  %v1076_v4 = vmul.f32 %v1951_v24, %v1012_v12  ;;  %v1016_v8 = vsub.f32 %v2471_v51, %v2628_v57 }
 0x1b3   : > { %v2673_v1 = vpop.eup %1952  ;;  %v971_v35 = vsub.f32 1.0, %v939_v62  ;;  %v847_v3 = vadd.f32 1e-05, %v815_v46  ;;  %v1017_v31 = vsub.f32 %v2475_v63, %v2628_v57  ;;  %v1018_v33 = vsub.f32 %v2483_v23, %v2645_v34 }
 0x1b4   : > { %v2679_v25 = vpop.eup %1954  ;;  %v2683_v13 = vpop.xlane.xlu0 %749  ;;  %1966 = vpow2.f32 %v1214_v22  ;;  %v1218_v37 = vmul.f32 1.442695, %v1138_v45  ;;  %v1077_v0 = vmul.f32 %v1951_v24, %v1013_v21  ;;  %v1019_v56 = vsub.f32 %v2487_v39, %v2645_v34 }
 0x1b5   : > { %v1957_v29 = vpop.eup %1956  ;;  %v816_v15 = vsub.f32 1.0, %v2683_v13  ;;  %v1140_v49 = vadd.f32 %v1076_v4, %v971_v35  ;;  %1968 = vrcp.f32 %v847_v3  ;;  %v1220_v23 = vmul.f32 1.442695, %v1139_v27 }
 0x1b6   : > { %v940_v18 = vmul.f32 %v1957_v29, %v812_v9  ;;  %1970 = vpow2.f32 %v1216_v43  ;;  %v1329_v19 = vadd.f32 %v2679_v25, %v2673_v1  ;;  %v1141_v24 = vadd.f32 %v1077_v0, %v971_v35 }
 0x1b7   : > { %v848_v51 = vadd.f32 1e-05, %v816_v15  ;;  %v2698_v63 = vpop.eup %1958  ;;  %v1078_v12 = vmul.f32 %v1957_v29, %v1014_v40  ;;  %v1020_v39 = vsub.f32 %v2495_v58, %v2662_v54  ;;  %1972 = vpow2.f32 %v1218_v37 }
 0x1b8   : > { %3426 = vst [vmem:[#allocation27_spill] sm:$0xff] %v2698_v63  ;;  %v972_v10 = vsub.f32 1.0, %v940_v18  ;;  %v2702_v62 = vpop.xlane.xlu0 %755  ;;  %v2704_v14 = vpop.xlane.xlu1 %752  ;;  %v1222_v28 = vmul.f32 1.442695, %v1140_v49  ;;  %v1079_v45 = vmul.f32 %v1957_v29, %v1015_v41  ;;  %1330 = vadd.xlane.f32.xlu1 %v1329_v19  ;;  %v1021_v4 = vsub.f32 %v2499_v11, %v2662_v54 }
 0x1b9   : > { %v1961_v9 = vpop.eup %1960  ;;  %v818_v21 = vsub.f32 1.0, %v2702_v62  ;;  %1974 = vrcp.f32 %v848_v51  ;;  %v817_v3 = vsub.f32 1.0, %v2704_v14  ;;  %v1224_v49 = vmul.f32 1.442695, %v1141_v24 }
 0x1ba   : > { %v2709_v22 = vpop.eup %1962  ;;  %v941_v43 = vmul.f32 %v1961_v9, %v813_v55  ;;  %v1142_v27 = vadd.f32 %v1078_v12, %v972_v10  ;;  %1976 = vpow2.f32 %v1220_v23  ;;  %v1143_v58 = vadd.f32 %v1079_v45, %v972_v10 }
 0x1bb   : > { %3427 = vst [vmem:[#allocation28_spill] sm:$0xff] %v2709_v22  ;;  %v850_v35 = vadd.f32 1e-05, %v818_v21  ;;  %v1080_v41 = vmul.f32 %v1961_v9, %v1016_v8  ;;  %v1332_v57 = vadd.f32 %v2709_v22, %v2698_v63  ;;  %v1022_v29 = vsub.f32 %v2507_v5, %v2683_v13 }
 0x1bc   : > { %v973_v40 = vsub.f32 1.0, %v941_v43  ;;  %v1965_v37 = vpop.eup %1964  ;;  %v2720_v55 = vpop.xlane.xlu0 %761  ;;  %v1023_v18 = vsub.f32 %v2511_v6, %v2683_v13  ;;  %v1226_v51 = vmul.f32 1.442695, %v1142_v27  ;;  %v1026_v23 = vsub.f32 %v2341_v36, %v2702_v62 }
 0x1bd   : > { %1978 = vrcp.f32 %v850_v35  ;;  %v942_v11 = vmul.f32 %v1965_v37, %v814_v47  ;;  %v2728_v0 = vpop.xlane.xlu1 %758  ;;  %v849_v10 = vadd.f32 1e-05, %v817_v3  ;;  %1333 = vadd.xlane.f32.xlu0 %v1332_v57  ;;  %v1228_v34 = vmul.f32 1.442695, %v1143_v58 }
 0x1be   : > { %1980 = vpow2.f32 %v1222_v28  ;;  %v1144_v8 = vadd.f32 %v1080_v41, %v973_v40  ;;  %v2734_v19 = vpop.eup %1966  ;;  %v1081_v47 = vmul.f32 %v1961_v9, %v1017_v31  ;;  %v820_v5 = vsub.f32 1.0, %v2720_v55 }
 0x1bf   : > { %3428 = vst [vmem:[#allocation29_spill] sm:$0xff] %v2734_v19  ;;  %v974_v24 = vsub.f32 1.0, %v942_v11  ;;  %v1969_v12 = vpop.eup %1968  ;;  %v1082_v6 = vmul.f32 %v1965_v37, %v1018_v33  ;;  %v1027_v28 = vsub.f32 %v2345_v38, %v2702_v62  ;;  %1982 = vrcp.f32 %v849_v10 }
 0x1c0   : > { %v819_v45 = vsub.f32 1.0, %v2728_v0  ;;  %v2740_v43 = vpop.eup %1970  ;;  %1984 = vpow2.f32 %v1224_v49  ;;  %v1145_v27 = vadd.f32 %v1081_v47, %v973_v40  ;;  %v1083_v35 = vmul.f32 %v1965_v37, %v1019_v56  ;;  %v2748_v10 = vpop.xlane.xlu0 %767 }
 0x1c1   : > { %3429 = vst [vmem:[#allocation30_spill] sm:$0xff] %v2740_v43  ;;  %v943_v58 = vmul.f32 %v1969_v12, %v815_v46  ;;  %1986 = vpow2.f32 %v1226_v51  ;;  %v1230_v31 = vmul.f32 1.442695, %v1144_v8  ;;  %v1146_v9 = vadd.f32 %v1082_v6, %v974_v24  ;;  %v2746_v41 = vpop.eup %1972 }
 0x1c2   : > { %v852_v33 = vadd.f32 1e-05, %v820_v5  ;;  %3430 = vst [vmem:[#allocation31_spill] sm:$0xff] %v2746_v41  ;;  %1988 = vpow2.f32 %v1228_v34  ;;  %v1147_v38 = vadd.f32 %v1083_v35, %v974_v24  ;;  %v1084_v11 = vmul.f32 %v1969_v12, %v1020_v39 }
 0x1c3   : > { %v975_v57 = vsub.f32 1.0, %v943_v58  ;;  %v1975_v49 = vpop.eup %1974  ;;  %v1024_v56 = vsub.f32 %v2519_v26, %v2704_v14  ;;  %v851_v54 = vadd.f32 1e-05, %v819_v45  ;;  %v1335_v46 = vadd.f32 %v2740_v43, %v2734_v19 }
 0x1c4   : > { %1990 = vrcp.f32 %v852_v33  ;;  %v2756_v40 = vpop.eup %1976  ;;  %v1232_v37 = vmul.f32 1.442695, %v1145_v27  ;;  %v1085_v51 = vmul.f32 %v1969_v12, %v1021_v4  ;;  %v944_v39 = vmul.f32 %v1975_v49, %v816_v15  ;;  %v2767_v12 = vpop.xlane.xlu1 %764 }
 0x1c5   : > { %3431 = vst [vmem:[#allocation32_spill] sm:$0xff] %v2756_v40  ;;  %v1148_v8 = vadd.f32 %v1084_v11, %v975_v57  ;;  %1992 = vpow2.f32 %v1230_v31  ;;  %v1234_v47 = vmul.f32 1.442695, %v1146_v9  ;;  %v1025_v26 = vsub.f32 %v2523_v52, %v2704_v14  ;;  %1336 = vadd.xlane.f32.xlu1 %v1335_v46 }
 0x1c6   : > { %v822_v24 = vsub.f32 1.0, %v2748_v10  ;;  %v1236_v35 = vmul.f32 1.442695, %v1147_v38  ;;  %v1149_v58 = vadd.f32 %v1085_v51, %v975_v57  ;;  %v976_v33 = vsub.f32 1.0, %v944_v39 }
 0x1c7   : > { %v1979_v34 = vpop.eup %1978  ;;  %v1086_v13 = vmul.f32 %v1975_v49, %v1022_v29  ;;  %v1030_v15 = vsub.f32 %v2365_v48, %v2720_v55  ;;  %1994 = vrcp.f32 %v851_v54  ;;  %v1238_v27 = vmul.f32 1.442695, %v1148_v8 }
 0x1c8   : > { %v2763_v6 = vpop.eup %1980  ;;  %v946_v4 = vmul.f32 %v1979_v34, %v818_v21  ;;  %v854_v52 = vadd.f32 1e-05, %v822_v24  ;;  %1996 = vpow2.f32 %v1232_v37  ;;  %v1087_v31 = vmul.f32 %v1975_v49, %v1023_v18 }
 0x1c9   : > { %3432 = vst [vmem:[#allocation33_spill] sm:$0xff] %v2763_v6  ;;  %v1983_v38 = vpop.eup %1982  ;;  %1998 = vpow2.f32 %v1234_v47  ;;  %v1150_v57 = vadd.f32 %v1086_v13, %v976_v33  ;;  %v1031_v21 = vsub.f32 %v2369_v50, %v2720_v55  ;;  %v821_v11 = vsub.f32 1.0, %v2767_v12  ;;  %v3437_v13 = vld [vmem:[#allocation4_spill] sm:$0xff] }
 0x1ca   : > { %v978_v9 = vsub.f32 1.0, %v946_v4  ;;  %v2776_v29 = vpop.eup %1984  ;;  %2000 = vpow2.f32 %v1236_v35  ;;  %v1240_v48 = vmul.f32 1.442695, %v1149_v58  ;;  %v1151_v54 = vadd.f32 %v1087_v31, %v976_v33  ;;  %v2799_v58 = vpop.xlane.xlu1 %770 }
 0x1cb   : > { %3433 = vst [vmem:[#allocation34_spill] sm:$0xff] %v2776_v29  ;;  %v1090_v46 = vmul.f32 %v1979_v34, %v1026_v23  ;;  %v2781_v37 = vpop.eup %1986  ;;  %v1091_v18 = vmul.f32 %v1979_v34, %v1027_v28  ;;  %v945_v49 = vmul.f32 %v1983_v38, %v817_v3  ;;  %v1028_v50 = vsub.f32 %v2353_v42, %v2728_v0  ;;  %v2793_v3 = vpop.xlane.xlu0 %773 }
 0x1cc   : > { %3434 = vst [vmem:[#allocation35_spill] sm:$0xff] %v2781_v37  ;;  %2002 = vrcp.f32 %v854_v52  ;;  %v2787_v51 = vpop.eup %1988  ;;  %v1029_v39 = vsub.f32 %v2357_v44, %v2728_v0  ;;  %v853_v36 = vadd.f32 1e-05, %v821_v11  ;;  %v1242_v23 = vmul.f32 1.442695, %v1150_v57 }
 0x1cd   : > { %3435 = vst [vmem:[#allocation36_spill] sm:$0xff] %v2787_v51  ;;  %2004 = vpow2.f32 %v1238_v27  ;;  %v1154_v8 = vadd.f32 %v1090_v46, %v978_v9  ;;  %v1155_v28 = vadd.f32 %v1091_v18, %v978_v9  ;;  %v977_v34 = vsub.f32 1.0, %v945_v49 }
 0x1ce   : > { %v1991_v62 = vpop.eup %1990  ;;  %v1088_v14 = vmul.f32 %v1983_v38, %v1024_v56  ;;  %2006 = vpow2.f32 %v1240_v48  ;;  %v1244_v42 = vmul.f32 1.442695, %v1151_v54  ;;  %v1034_v35 = vsub.f32 %v2389_v60, %v2748_v10  ;;  %v3439_v54 = vld [vmem:[#allocation2_spill] sm:$0xff] }
 0x1cf   : > { %v948_v47 = vmul.f32 %v1991_v62, %v820_v5  ;;  %v2801_v44 = vpop.eup %1992  ;;  %v1089_v33 = vmul.f32 %v1983_v38, %v1025_v26  ;;  %v1035_v52 = vsub.f32 %v3437_v13, %v2748_v10  ;;  %v1338_v56 = vadd.f32 %v2756_v40, %v2746_v41 }
 0x1d0   : > { %3436 = vst [vmem:[#allocation37_spill] sm:$0xff] %v2801_v44  ;;  %v1152_v4 = vadd.f32 %v1088_v14, %v977_v34  ;;  %v1250_v27 = vmul.f32 1.442695, %v1154_v8  ;;  %2008 = vrcp.f32 %v853_v36  ;;  %v824_v55 = vsub.f32 1.0, %v2793_v3 }
 0x1d1   : > { %v980_v31 = vsub.f32 1.0, %v948_v47  ;;  %v1995_v5 = vpop.eup %1994  ;;  %2010 = vpow2.f32 %v1242_v23  ;;  %v1252_v60 = vmul.f32 1.442695, %v1155_v28  ;;  %v1094_v9 = vmul.f32 %v1991_v62, %v1030_v15  ;;  %1339 = vadd.xlane.f32.xlu0 %v1338_v56 }
 0x1d2   : > { %v3373_v57 = vsub.f32 1.0, %v2799_v58  ;;  %v2809_v26 = vpop.eup %1996  ;;  %2012 = vpow2.f32 %v1244_v42  ;;  %v1153_v38 = vadd.f32 %v1089_v33, %v977_v34  ;;  %v947_v48 = vmul.f32 %v1995_v5, %v819_v45  ;;  %v2823_v45 = vpop.xlane.xlu0 %779 }
 0x1d3   : > { %3438 = vst [vmem:[#allocation4_spill] sm:$0xff] %v2809_v26  ;;  %v1032_v46 = vsub.f32 %v3439_v54, %v2767_v12  ;;  %v2815_v18 = vpop.eup %1998  ;;  %v1246_v49 = vmul.f32 1.442695, %v1152_v4  ;;  %v1095_v8 = vmul.f32 %v1991_v62, %v1031_v21  ;;  %v1158_v36 = vadd.f32 %v1094_v9, %v980_v31  ;;  %v2827_v62 = vpop.xlane.xlu1 %776 }
 0x1d4   : > { %3440 = vst [vmem:[#allocation2_spill] sm:$0xff] %v2815_v18  ;;  %v856_v15 = vadd.f32 1e-05, %v824_v55  ;;  %v2819_v23 = vpop.eup %2000  ;;  %2014 = vpow2.f32 %v1250_v27  ;;  %v979_v28 = vsub.f32 1.0, %v947_v48  ;;  %v1092_v14 = vmul.f32 %v1995_v5, %v1028_v50  ;;  %v3442_v48 = vld [vmem:[#allocation3_spill] sm:$0xff] }
 0x1d5   : > { %3441 = vst [vmem:[#allocation38_spill] sm:$0xff] %v2819_v23  ;;  %v855_v0 = vadd.f32 1e-05, %v3373_v57  ;;  %v1159_v42 = vadd.f32 %v1095_v8, %v980_v31  ;;  %v1093_v47 = vmul.f32 %v1995_v5, %v1029_v39  ;;  %v1341_v21 = vadd.f32 %v2776_v29, %v2763_v6  ;;  %v3443_v8 = vld [vmem:[#allocation7_spill] sm:$0xff] }
 0x1d6   : > { %v2003_v34 = vpop.eup %2002  ;;  %2016 = vrcp.f32 %v856_v15  ;;  %v1248_v4 = vmul.f32 1.442695, %v1153_v38  ;;  %v1156_v56 = vadd.f32 %v1092_v14, %v979_v28  ;;  %v1258_v27 = vmul.f32 1.442695, %v1158_v36  ;;  %v3444_v14 = vld [vmem:[#allocation8_spill] sm:$0xff] }
 0x1d7   : > { %v2829_v33 = vpop.eup %2004  ;;  %2018 = vpow2.f32 %v1252_v60  ;;  %v950_v50 = vmul.f32 %v2003_v34, %v822_v24  ;;  %v1157_v9 = vadd.f32 %v1093_v47, %v979_v28  ;;  %1342 = vadd.xlane.f32.xlu1 %v1341_v21  ;;  %v3372_v39 = vsub.f32 1.0, %v2823_v45  ;;  %v3445_v21 = vld [vmem:[#allocation5_spill] sm:$0xff] }
 0x1d8   : > { %2020 = vpow2.f32 %v1246_v49  ;;  %v2834_v31 = vpop.eup %2006  ;;  %v1033_v54 = vsub.f32 %v3442_v48, %v2767_v12  ;;  %v1038_v60 = vsub.f32 %v3443_v8, %v2793_v3  ;;  %v1260_v38 = vmul.f32 1.442695, %v1159_v42  ;;  %v2847_v48 = vpop.xlane.xlu0 %785 }
 0x1d9   : > { %v982_v5 = vsub.f32 1.0, %v950_v50  ;;  %2022 = vrcp.f32 %v855_v0  ;;  %v1098_v15 = vmul.f32 %v2003_v34, %v1034_v35  ;;  %v858_v24 = vadd.f32 1e-05, %v3372_v39  ;;  %v2853_v39 = vpop.xlane.xlu1 %782 }
 0x1da   : > { %v3374_v49 = vsub.f32 1.0, %v2827_v62  ;;  %v2009_v36 = vpop.eup %2008  ;;  %2024 = vpow2.f32 %v1248_v4  ;;  %v1254_v28 = vmul.f32 1.442695, %v1156_v56  ;;  %v1039_v47 = vsub.f32 %v3444_v14, %v2793_v3  ;;  %v3446_v14 = vld [vmem:[#allocation6_spill] sm:$0xff] }
 0x1db   : > { %v1036_v50 = vsub.f32 %v3445_v21, %v2799_v58  ;;  %v2849_v8 = vpop.eup %2010  ;;  %2026 = vpow2.f32 %v1258_v27  ;;  %v1256_v35 = vmul.f32 1.442695, %v1157_v9  ;;  %v1162_v0 = vadd.f32 %v1098_v15, %v982_v5 }
 0x1dc   : > { %v949_v42 = vmul.f32 %v2009_v36, %v821_v11  ;;  %v2855_v4 = vpop.eup %2012  ;;  %v1099_v56 = vmul.f32 %v2003_v34, %v1035_v52  ;;  %2028 = vrcp.f32 %v858_v24  ;;  %v857_v27 = vadd.f32 1e-05, %v3374_v49 }
 0x1dd   : > { %2030 = vpow2.f32 %v1260_v38  ;;  %v1344_v12 = vadd.f32 %v2787_v51, %v2781_v37  ;;  %v3375_v11 = vsub.f32 1.0, %v2847_v48  ;;  %v1096_v10 = vmul.f32 %v2009_v36, %v1032_v46 }
 0x1de   : > { %v981_v9 = vsub.f32 1.0, %v949_v42  ;;  %v2867_v15 = vpop.eup %2014  ;;  %2032 = vpow2.f32 %v1254_v28  ;;  %v1163_v57 = vadd.f32 %v1099_v56, %v982_v5  ;;  %v3376_v13 = vsub.f32 1.0, %v2853_v39  ;;  %v3447_v28 = vld [vmem:[#allocation11_spill] sm:$0xff] }
 0x1df   : > { %2034 = vpow2.f32 %v1256_v35  ;;  %v1266_v34 = vmul.f32 1.442695, %v1162_v0  ;;  %v1097_v24 = vmul.f32 %v2009_v36, %v1033_v54  ;;  %1345 = vadd.xlane.f32.xlu0 %v1344_v12  ;;  %v860_v38 = vadd.f32 1e-05, %v3375_v11  ;;  %v3448_v35 = vld [vmem:[#allocation12_spill] sm:$0xff]  ;;  %v2884_v0 = vpop.xlane.xlu0 %791 }
 0x1e0   : > { %v2017_v52 = vpop.eup %2016  ;;  %v1160_v49 = vadd.f32 %v1096_v10, %v981_v9  ;;  %v1042_v5 = vsub.f32 %v3447_v28, %v2823_v45  ;;  %2036 = vrcp.f32 %v857_v27  ;;  %v1043_v54 = vsub.f32 %v3448_v35, %v2823_v45 }
 0x1e1   : > { %v2872_v42 = vpop.eup %2018  ;;  %v952_v21 = vmul.f32 %v2017_v52, %v824_v55  ;;  %v1161_v56 = vadd.f32 %v1097_v24, %v981_v9  ;;  %2038 = vrcp.f32 %v860_v38  ;;  %v859_v36 = vadd.f32 1e-05, %v3376_v13  ;;  %v3450_v24 = vld [vmem:[#allocation9_spill] sm:$0xff]  ;;  %v3451_v38 = vld [vmem:[#allocation10_spill] sm:$0xff] }
 0x1e2   : > { %v2878_v46 = vpop.eup %2020  ;;  %v1268_v10 = vmul.f32 1.442695, %v1163_v57  ;;  %v1102_v55 = vmul.f32 %v2017_v52, %v1038_v60  ;;  %v1347_v28 = vadd.f32 %v2809_v26, %v2801_v44  ;;  %2040 = vpow2.f32 %v1266_v34  ;;  %v3452_v57 = vld [vmem:[#allocation15_spill] sm:$0xff] }
 0x1e3   : > { %v2023_v12 = vpop.eup %2022  ;;  %v984_v3 = vsub.f32 1.0, %v952_v21  ;;  %v3449_v27 = vsub.f32 1.0, %v2799_v58  ;;  %v1040_v35 = vsub.f32 %v3450_v24, %v2827_v62  ;;  %v1041_v11 = vsub.f32 %v3451_v38, %v2827_v62  ;;  %v2901_v24 = vpop.xlane.xlu1 %788 }
 0x1e4   : > { %v2894_v13 = vpop.eup %2024  ;;  %v1262_v51 = vmul.f32 1.442695, %v1160_v49  ;;  %v1046_v60 = vsub.f32 %v3452_v57, %v2847_v48  ;;  %1348 = vadd.xlane.f32.xlu1 %v1347_v28  ;;  %v3385_v21 = vsub.f32 1.0, %v2884_v0  ;;  %v1264_v26 = vmul.f32 1.442695, %v1161_v56  ;;  %v3453_v49 = vld [vmem:[#allocation16_spill] sm:$0xff] }
 0x1e5   : > { %v951_v9 = vmul.f32 %v2023_v12, %v3449_v27  ;;  %v1166_v37 = vadd.f32 %v1102_v55, %v984_v3  ;;  %v2899_v34 = vpop.eup %2026  ;;  %v1103_v27 = vmul.f32 %v2017_v52, %v1039_v47  ;;  %2042 = vrcp.f32 %v859_v36  ;;  %v3455_v47 = vld [vmem:[#allocation13_spill] sm:$0xff]  ;;  %v3456_v36 = vld [vmem:[#allocation14_spill] sm:$0xff] }
 0x1e6   : > { %v2029_v29 = vpop.eup %2028  ;;  %2044 = vpow2.f32 %v1268_v10  ;;  %v1100_v38 = vmul.f32 %v2023_v12, %v1036_v50  ;;  %v1047_v55 = vsub.f32 %v3453_v49, %v2847_v48  ;;  %v862_v57 = vadd.f32 1e-05, %v3385_v21  ;;  %v2915_v10 = vpop.xlane.xlu0 %797 }
 0x1e7   : > { %v983_v44 = vsub.f32 1.0, %v951_v9  ;;  %v2907_v28 = vpop.eup %2030  ;;  %v1167_v6 = vadd.f32 %v1103_v27, %v984_v3  ;;  %v3454_v40 = vsub.f32 1.0, %v2823_v45  ;;  %v1044_v52 = vsub.f32 %v3455_v47, %v2853_v39 }
 0x1e8   : > { %v2917_v50 = vpop.eup %2032  ;;  %2046 = vpow2.f32 %v1262_v51  ;;  %v1274_v49 = vmul.f32 1.442695, %v1166_v37  ;;  %v3390_v21 = vsub.f32 1.0, %v2901_v24  ;;  %v1106_v27 = vmul.f32 %v2029_v29, %v1042_v5 }
 0x1e9   : > { %v954_v56 = vmul.f32 %v2029_v29, %v3454_v40  ;;  %v1164_v41 = vadd.f32 %v1100_v38, %v983_v44  ;;  %v2920_v43 = vpop.eup %2034  ;;  %2048 = vpow2.f32 %v1264_v26  ;;  %v3457_v40 = vsub.f32 %v3446_v14, %v2799_v58 }
 0x1ea   : > { %v2037_v47 = vpop.eup %2036  ;;  %2050 = vrcp.f32 %v862_v57  ;;  %v861_v9 = vadd.f32 1e-05, %v3390_v21  ;;  %v1350_v37 = vadd.f32 %v2819_v23, %v2815_v18  ;;  %v1276_v19 = vmul.f32 1.442695, %v1167_v6 }
 0x1eb   : > { %v1101_v45 = vmul.f32 %v2023_v12, %v3457_v40  ;;  %v986_v3 = vsub.f32 1.0, %v954_v56  ;;  %v2039_v38 = vpop.eup %2038  ;;  %v1107_v26 = vmul.f32 %v2029_v29, %v1043_v54  ;;  %v3458_v63 = vsub.f32 1.0, %v2827_v62 }
 0x1ec   : > { %2052 = vpow2.f32 %v1274_v49  ;;  %v1270_v14 = vmul.f32 1.442695, %v1164_v41  ;;  %v3459_v12 = vsub.f32 1.0, %v2847_v48  ;;  %1351 = vadd.xlane.f32.xlu0 %v1350_v37  ;;  %v2934_v56 = vpop.eup %2040  ;;  %v1104_v23 = vmul.f32 %v2037_v47, %v1040_v35 }
 0x1ed   : > { %v1165_v22 = vadd.f32 %v1101_v45, %v983_v44  ;;  %v953_v58 = vmul.f32 %v2037_v47, %v3458_v63  ;;  %v1170_v5 = vadd.f32 %v1106_v27, %v986_v3  ;;  %v1171_v40 = vadd.f32 %v1107_v26, %v986_v3  ;;  %v2938_v63 = vpop.xlane.xlu1 %794 }
 0x1ee   : > { %v956_v57 = vmul.f32 %v2039_v38, %v3459_v12  ;;  %v1105_v51 = vmul.f32 %v2037_v47, %v1041_v11  ;;  %v1110_v6 = vmul.f32 %v2039_v38, %v1046_v60  ;;  %2054 = vrcp.f32 %v861_v9  ;;  %v3462_v47 = vld [vmem:[#allocation19_spill] sm:$0xff] }
 0x1ef   : > { %v985_v21 = vsub.f32 1.0, %v953_v58  ;;  %v3460_v29 = vsub.f32 1.0, %v2915_v10  ;;  %v2043_v41 = vpop.eup %2042  ;;  %v1272_v62 = vmul.f32 1.442695, %v1165_v22  ;;  %v1111_v49 = vmul.f32 %v2039_v38, %v1047_v55 }
 0x1f0   : > { %v988_v18 = vsub.f32 1.0, %v956_v57  ;;  %v2940_v45 = vpop.eup %2044  ;;  %2056 = vpow2.f32 %v1276_v19  ;;  %v1282_v3 = vmul.f32 1.442695, %v1170_v5  ;;  %v3461_v11 = vsub.f32 1.0, %v2853_v39  ;;  %v3464_v5 = vld [vmem:[#allocation17_spill] sm:$0xff]  ;;  %v3465_v57 = vld [vmem:[#allocation18_spill] sm:$0xff] }
 0x1f1   : > { %v864_v44 = vadd.f32 1e-05, %v3460_v29  ;;  %v1168_v54 = vadd.f32 %v1104_v23, %v985_v21  ;;  %v1169_v48 = vadd.f32 %v1105_v51, %v985_v21  ;;  %2058 = vpow2.f32 %v1270_v14  ;;  %v3463_v21 = vld [vmem:[#allocation20_spill] sm:$0xff] }
 0x1f2   : > { %v1174_v27 = vadd.f32 %v1110_v6, %v988_v18  ;;  %v955_v35 = vmul.f32 %v2043_v41, %v3461_v11  ;;  %v1284_v60 = vmul.f32 1.442695, %v1171_v40  ;;  %v1175_v9 = vadd.f32 %v1111_v49, %v988_v18  ;;  %v2946_v26 = vpop.eup %2046  ;;  %v2957_v6 = vpop.xlane.xlu1 %800 }
 0x1f3   : > { %v1050_v37 = vsub.f32 %v3462_v47, %v2884_v0  ;;  %v1278_v22 = vmul.f32 1.442695, %v1168_v54  ;;  %v1051_v55 = vsub.f32 %v3463_v21, %v2884_v0  ;;  %2060 = vrcp.f32 %v864_v44  ;;  %v2950_v19 = vpop.eup %2048 }
 0x1f4   : > { %v987_v23 = vsub.f32 1.0, %v955_v35  ;;  %2062 = vpow2.f32 %v1272_v62  ;;  %v1280_v51 = vmul.f32 1.442695, %v1169_v48  ;;  %v1108_v38 = vmul.f32 %v2043_v41, %v1044_v52  ;;  %v2051_v14 = vpop.eup %2050 }
 0x1f5   : > { %v831_v58 = vsub.f32 1.0, %v2938_v63  ;;  %2064 = vpow2.f32 %v1282_v3  ;;  %v1290_v18 = vmul.f32 1.442695, %v1174_v27  ;;  %v1048_v12 = vsub.f32 %v3464_v5, %v2901_v24  ;;  %v3468_v3 = vld [vmem:[#allocation23_spill] sm:$0xff] }
 0x1f6   : > { %v1049_v40 = vsub.f32 %v3465_v57, %v2901_v24  ;;  %2066 = vpow2.f32 %v1284_v60  ;;  %v1292_v29 = vmul.f32 1.442695, %v1175_v9  ;;  %v1172_v44 = vadd.f32 %v1108_v38, %v987_v23  ;;  %v2961_v52 = vpop.eup %2052 }
 0x1f7   : > { %v3466_v62 = vsub.f32 1.0, %v2884_v0  ;;  %2068 = vpow2.f32 %v1278_v22  ;;  %v3467_v48 = vsub.f32 %v3456_v36, %v2853_v39  ;;  %v1054_v27 = vsub.f32 %v3468_v3, %v2915_v10 }
 0x1f8   : > { %v863_v11 = vadd.f32 1e-05, %v831_v58  ;;  %2070 = vpow2.f32 %v1280_v51  ;;  %v1353_v60 = vadd.f32 %v2834_v31, %v2829_v33  ;;  %v833_v0 = vsub.f32 1.0, %v2957_v6  ;;  %v2055_v9 = vpop.eup %2054 }
 0x1f9   : > { %v958_v54 = vmul.f32 %v2051_v14, %v3466_v62  ;;  %v1109_v49 = vmul.f32 %v2043_v41, %v3467_v48  ;;  %2072 = vpow2.f32 %v1290_v18  ;;  %v1114_v22 = vmul.f32 %v2051_v14, %v1050_v37 }
 0x1fa   : > { %v1356_v39 = vadd.f32 %v2855_v4, %v2849_v8  ;;  %2074 = vpow2.f32 %v1292_v29  ;;  %v1286_v36 = vmul.f32 1.442695, %v1172_v44  ;;  %v1115_v41 = vmul.f32 %v2051_v14, %v1051_v55  ;;  %1354 = vadd.xlane.f32.xlu1 %v1353_v60  ;;  %v2977_v51 = vpop.eup %2056 }
 0x1fb   : > { %v990_v35 = vsub.f32 1.0, %v958_v54  ;;  %v1173_v47 = vadd.f32 %v1109_v49, %v987_v23  ;;  %v3469_v21 = vsub.f32 1.0, %v2901_v24  ;;  %2076 = vrcp.f32 %v863_v11  ;;  %v2983_v23 = vpop.eup %2058  ;;  %v3470_v54 = vld [vmem:[#allocation24_spill] sm:$0xff] }
 0x1fc   : > { %v865_v57 = vadd.f32 1e-05, %v833_v0  ;;  %1357 = vadd.xlane.f32.xlu0 %v1356_v39  ;;  %v1362_v37 = vadd.f32 %v2872_v42, %v2867_v15  ;;  %v1112_v29 = vmul.f32 %v2055_v9, %v1048_v12  ;;  %v1113_v55 = vmul.f32 %v2055_v9, %v1049_v40 }
 0x1fd   : > { %v957_v38 = vmul.f32 %v2055_v9, %v3469_v21  ;;  %v1178_v5 = vadd.f32 %v1114_v22, %v990_v35  ;;  %v1359_v24 = vadd.f32 %v2894_v13, %v2878_v46  ;;  %v2061_v14 = vpop.eup %2060  ;;  %v1288_v44 = vmul.f32 1.442695, %v1173_v47 }
 0x1fe   : > { %v1179_v62 = vadd.f32 %v1115_v41, %v990_v35  ;;  %v1055_v48 = vsub.f32 %v3470_v54, %v2915_v10  ;;  %2078 = vrcp.f32 %v865_v57  ;;  %v2989_v49 = vpop.eup %2062  ;;  %v3471_v60 = vsub.f32 1.0, %v2915_v10  ;;  %v3472_v54 = vld [vmem:[#allocation21_spill] sm:$0xff] }
 0x1ff   : > { %v989_v18 = vsub.f32 1.0, %v957_v38  ;;  %1360 = vadd.xlane.f32.xlu1 %v1359_v24  ;;  %v1365_v12 = vadd.f32 %v2920_v43, %v2917_v50  ;;  %v2995_v40 = vpop.eup %2064  ;;  %2080 = vpow2.f32 %v1286_v36  ;;  %v1298_v9 = vmul.f32 1.442695, %v1178_v5 }
 0x200   : > { %v960_v22 = vmul.f32 %v2061_v14, %v3471_v60  ;;  %1363 = vadd.xlane.f32.xlu0 %v1362_v37  ;;  %v1368_v35 = vadd.f32 %v2907_v28, %v2899_v34  ;;  %v2999_v47 = vpop.eup %2066  ;;  %v1118_v21 = vmul.f32 %v2061_v14, %v1054_v27  ;;  %v1119_v38 = vmul.f32 %v2061_v14, %v1055_v48 }
 0x201   : > { %v1176_v3 = vadd.f32 %v1112_v29, %v989_v18  ;;  %v1177_v11 = vadd.f32 %v1113_v55, %v989_v18  ;;  %v3001_v10 = vpop.eup %2068  ;;  %2082 = vpow2.f32 %v1288_v44  ;;  %v1300_v29 = vmul.f32 1.442695, %v1179_v62 }
 0x202   : > { %v992_v41 = vsub.f32 1.0, %v960_v22  ;;  %v3003_v18 = vpop.eup %2070  ;;  %v1371_v5 = vadd.f32 %v2950_v19, %v2946_v26  ;;  %2084 = vpow2.f32 %v1298_v9  ;;  %v1374_v27 = vadd.f32 %v2940_v45, %v2934_v56  ;;  %v3474_v9 = vld [vmem:[#allocation25_spill] sm:$0xff] }
 0x203   : > { %v1294_v39 = vmul.f32 1.442695, %v1176_v3  ;;  %v1296_v57 = vmul.f32 1.442695, %v1177_v11  ;;  %1366 = vadd.xlane.f32.xlu1 %v1365_v12  ;;  %v3007_v37 = vpop.eup %2072  ;;  %v1052_v48 = vsub.f32 %v3472_v54, %v2938_v63  ;;  %v3473_v11 = vld [vmem:[#allocation22_spill] sm:$0xff]  ;;  %v1377_v22 = vadd.f32 %v2989_v49, %v2983_v23 }
 0x204   : > { %v1182_v55 = vadd.f32 %v1118_v21, %v992_v41  ;;  %v1183_v36 = vadd.f32 %v1119_v38, %v992_v41  ;;  %1369 = vadd.xlane.f32.xlu0 %v1368_v35  ;;  %v3011_v24 = vpop.eup %2074  ;;  %v1053_v60 = vsub.f32 %v3473_v11, %v2938_v63  ;;  %v1056_v35 = vsub.f32 %v3474_v9, %v2957_v6 }
 0x205   : > { %2086 = vpow2.f32 %v1294_v39  ;;  %v2077_v44 = vpop.eup %2076  ;;  %v3475_v39 = vld [vmem:[#allocation26_spill] sm:$0xff]  ;;  %v1380_v21 = vadd.f32 %v2977_v51, %v2961_v52 }
 0x206   : > { %v1306_v14 = vmul.f32 1.442695, %v1182_v55  ;;  %2088 = vpow2.f32 %v1296_v57  ;;  %v1308_v62 = vmul.f32 1.442695, %v1183_v36  ;;  %v959_v3 = vmul.f32 %v2077_v44, %v831_v58 }
 0x207   : > { %2090 = vpow2.f32 %v1300_v29  ;;  %1372 = vadd.xlane.f32.xlu1 %v1371_v5  ;;  %v1057_v41 = vsub.f32 %v3475_v39, %v2957_v6  ;;  %v1116_v38 = vmul.f32 %v2077_v44, %v1052_v48  ;;  %v1117_v57 = vmul.f32 %v2077_v44, %v1053_v60 }
 0x208   : > { %v2079_v12 = vpop.eup %2078  ;;  %2092 = vpow2.f32 %v1306_v14  ;;  %1375 = vadd.xlane.f32.xlu0 %v1374_v27  ;;  %v991_v58 = vsub.f32 1.0, %v959_v3  ;;  %v1383_v36 = vadd.f32 %v3003_v18, %v3001_v10  ;;  %v1386_v44 = vadd.f32 %v2999_v47, %v2995_v40 }
 0x209   : > { %v961_v63 = vmul.f32 %v2079_v12, %v833_v0  ;;  %v3029_v29 = vpop.eup %2080  ;;  %2094 = vpow2.f32 %v1308_v62  ;;  %v1120_v55 = vmul.f32 %v2079_v12, %v1056_v35  ;;  %v1121_v27 = vmul.f32 %v2079_v12, %v1057_v41 }
 0x20a   : > { %v1180_v5 = vadd.f32 %v1116_v38, %v991_v58  ;;  %v1181_v14 = vadd.f32 %v1117_v57, %v991_v58  ;;  %v1392_v39 = vadd.f32 %v3011_v24, %v3007_v37 }
 0x20b   : > { %v993_v54 = vsub.f32 1.0, %v961_v63  ;;  %1378 = vadd.xlane.f32.xlu1 %v1377_v22  ;;  %v3033_v11 = vpop.eup %2082 }
 0x20c   : > { %1381 = vadd.xlane.f32.xlu0 %v1380_v21  ;;  %v1302_v6 = vmul.f32 1.442695, %v1180_v5  ;;  %v1304_v0 = vmul.f32 1.442695, %v1181_v14  ;;  %v3037_v62 = vpop.eup %2084  ;;  %v1389_v22 = vadd.f32 %v3033_v11, %v3029_v29 }
 0x20d   : > { %v1184_v48 = vadd.f32 %v1120_v55, %v993_v54  ;;  %v1185_v3 = vadd.f32 %v1121_v27, %v993_v54 }
 0x20e   : > { %2096 = vpow2.f32 %v1302_v6 }
 0x20f   : > { %v3039_v60 = vpop.eup %2086  ;;  %v1310_v9 = vmul.f32 1.442695, %v1184_v48  ;;  %v1312_v35 = vmul.f32 1.442695, %v1185_v3  ;;  %1384 = vadd.xlane.f32.xlu1 %v1383_v36  ;;  %2098 = vpow2.f32 %v1304_v0 }
 0x210   : > { %v3043_v12 = vpop.eup %2088  ;;  %1387 = vadd.xlane.f32.xlu0 %v1386_v44 }
 0x211   : > { %v3047_v41 = vpop.eup %2090  ;;  %2100 = vpow2.f32 %v1310_v9  ;;  %v1395_v58 = vadd.f32 %v3043_v12, %v3039_v60 }
 0x212   : > { %v3049_v21 = vpop.eup %2092  ;;  %2102 = vpow2.f32 %v1312_v35  ;;  %v1398_v57 = vadd.f32 %v3047_v41, %v3037_v62  ;;  %v281_v35 = vld [vmem:[%s3342_s2] sm:$0xff] }
 0x213   : > { %1390 = vadd.xlane.f32.xlu1 %v1389_v22  ;;  %v3053_v38 = vpop.eup %2094  ;;  %v282_v22 = vld [vmem:[%s3342_s2 + $0x8] sm:$0xff] }
 0x214   : > { %1393 = vadd.xlane.f32.xlu0 %v1392_v39  ;;  %v1404_v63 = vadd.f32 %v3053_v38, %v3049_v21 }
 0x217   : > { %1396 = vadd.xlane.f32.xlu1 %v1395_v58 }
 0x218   : > { %1399 = vadd.xlane.f32.xlu0 %v1398_v57  ;;  %v3059_v55 = vpop.eup %2096 }
 0x219   : > { %v3061_v36 = vpop.eup %2098 }
 0x21a   : > { %v1401_v14 = vadd.f32 %v3061_v36, %v3059_v55 }
 0x21b   : > { %v3063_v5 = vpop.eup %2100 }
 0x21c   : > { %v3067_v54 = vpop.eup %2102  ;;  %1405 = vadd.xlane.f32.xlu0 %v1404_v63  ;;  %1402 = vadd.xlane.f32.xlu1 %v1401_v14 }
 0x21d   : > { %v1407_v27 = vadd.f32 %v3067_v54, %v3063_v5 }
 0x220   : > { %1408 = vadd.xlane.f32.xlu1 %v1407_v27 }
 0x22f   : > { %v1316_v44 = vpop.xlane.xlu0 %1315 }
 0x230   : > { %2104 = vrcp.f32 %v1316_v44 }
 0x233   : > { %v1319_v6 = vpop.xlane.xlu1 %1318 }
 0x234   : > { %2106 = vrcp.f32 %v1319_v6  ;;  %v283_v6 = vld [vmem:[%s3342_s2 + $0x10] sm:$0xff] }
 0x237   : > { %v1322_v0 = vpop.xlane.xlu0 %1321 }
 0x238   : > { %2108 = vrcp.f32 %v1322_v0  ;;  %v284_v0 = vld [vmem:[%s3342_s2 + $0x18] sm:$0xff] }
 0x23a   : > { %v2105_v48 = vpop.eup %2104 }
 0x23b   : > { %v1442_v3 = vmul.f32 0.5, %v2105_v48  ;;  %v1325_v9 = vpop.xlane.xlu1 %1324 }
 0x23c   : > { %2110 = vrcp.f32 %v1325_v9 }
 0x23d   : > { %v1474_v39 = vmul.f32 %v2588_v2, %v1442_v3  ;;  %v1475_v58 = vmul.f32 %v2590_v61, %v1442_v3 }
 0x23e   : > { %v2107_v57 = vpop.eup %2106 }
 0x23f   : > { %v1443_v63 = vmul.f32 0.5, %v2107_v57  ;;  %v1328_v14 = vpop.xlane.xlu0 %1327  ;;  %v1538_v27 = vadd.f32 %v1474_v39, %v281_v35  ;;  %v1539_v44 = vadd.f32 %v1475_v58, %v282_v22  ;;  %v285_v22 = vld [vmem:[%s3342_s2 + $0x20] sm:$0xff]  ;;  %v286_v39 = vld [vmem:[%s3342_s2 + $0x28] sm:$0xff] }
 0x240   : > { %2112 = vrcp.f32 %v1328_v14 }
 0x241   : > { %v1476_v48 = vmul.f32 %v2604_v17, %v1443_v63  ;;  %v1477_v2 = vmul.f32 %v2607_v53, %v1443_v63  ;;  %v1602_v9 = vmax.f32 %v1538_v27, %v1539_v44 }
 0x242   : > { %v2109_v61 = vpop.eup %2108 }
 0x243   : > { %v1444_v3 = vmul.f32 0.5, %v2109_v61  ;;  %1603 = vmax.xlane.f32.xlu0 %v1602_v9  ;;  %v1540_v57 = vadd.f32 %v1476_v48, %v283_v6  ;;  %v1541_v35 = vadd.f32 %v1477_v2, %v284_v0  ;;  %v287_v0 = vld [vmem:[%s3342_s2 + $0x30] sm:$0xff]  ;;  %v288_v48 = vld [vmem:[%s3342_s2 + $0x38] sm:$0xff] }
 0x245   : > { %v1478_v58 = vmul.f32 %v2621_v7, %v1444_v3  ;;  %v1479_v17 = vmul.f32 %v2624_v20, %v1444_v3  ;;  %v1605_v14 = vmax.f32 %v1540_v57, %v1541_v35  ;;  %v1331_v27 = vpop.xlane.xlu1 %1330 }
 0x246   : > { %v2111_v53 = vpop.eup %2110  ;;  %2114 = vrcp.f32 %v1331_v27 }
 0x247   : > { %v1445_v63 = vmul.f32 0.5, %v2111_v53  ;;  %1606 = vmax.xlane.f32.xlu1 %v1605_v14  ;;  %v1542_v44 = vadd.f32 %v1478_v58, %v285_v22  ;;  %v1543_v6 = vadd.f32 %v1479_v17, %v286_v39  ;;  %v289_v22 = vld [vmem:[%s3342_s2 + $0x40] sm:$0xff]  ;;  %v290_v39 = vld [vmem:[%s3342_s2 + $0x48] sm:$0xff] }
 0x249   : > { %v1480_v7 = vmul.f32 %v2634_v30, %v1445_v63  ;;  %v1481_v20 = vmul.f32 %v2639_v16, %v1445_v63  ;;  %v1608_v2 = vmax.f32 %v1542_v44, %v1543_v6  ;;  %v291_v6 = vld [vmem:[%s3342_s2 + $0x50] sm:$0xff] }
 0x24a   : > { %v2113_v9 = vpop.eup %2112  ;;  %v1334_v35 = vpop.xlane.xlu0 %1333 }
 0x24b   : > { %v1446_v61 = vmul.f32 0.5, %v2113_v9  ;;  %1609 = vmax.xlane.f32.xlu0 %v1608_v2  ;;  %v1544_v3 = vadd.f32 %v1480_v7, %v287_v0  ;;  %v1545_v57 = vadd.f32 %v1481_v20, %v288_v48  ;;  %2116 = vrcp.f32 %v1334_v35 }
 0x24d   : > { %v1482_v58 = vmul.f32 %v2651_v59, %v1446_v61  ;;  %v1483_v30 = vmul.f32 %v2656_v32, %v1446_v61  ;;  %v1611_v16 = vmax.f32 %v1544_v3, %v1545_v57  ;;  %v292_v59 = vld [vmem:[%s3342_s2 + $0x58] sm:$0xff]  ;;  %v293_v61 = vld [vmem:[%s3342_s2 + $0x60] sm:$0xff]  ;;  %v294_v3 = vld [vmem:[%s3342_s2 + $0x68] sm:$0xff] }
 0x24e   : > { %v3476_v57 = vld [vmem:[#allocation27_spill] sm:$0xff] }
 0x24f   : > { %1612 = vmax.xlane.f32.xlu1 %v1611_v16  ;;  %v1546_v17 = vadd.f32 %v1482_v58, %v289_v22  ;;  %v1547_v14 = vadd.f32 %v1483_v30, %v290_v39  ;;  %v3477_v22 = vld [vmem:[#allocation28_spill] sm:$0xff] }
 0x250   : > { %v2115_v63 = vpop.eup %2114 }
 0x251   : > { %v1614_v53 = vmax.f32 %v1546_v17, %v1547_v14  ;;  %v1447_v27 = vmul.f32 0.5, %v2115_v63  ;;  %v295_v14 = vld [vmem:[%s3342_s2 + $0x70] sm:$0xff]  ;;  %v3478_v63 = vld [vmem:[#allocation29_spill] sm:$0xff] }
 0x252   : > { %v1337_v44 = vpop.xlane.xlu1 %1336 }
 0x253   : > { %1615 = vmax.xlane.f32.xlu0 %v1614_v53  ;;  %v1484_v32 = vmul.f32 %v2673_v1, %v1447_v27  ;;  %v1485_v0 = vmul.f32 %v2679_v25, %v1447_v27  ;;  %2118 = vrcp.f32 %v1337_v44  ;;  %v296_v53 = vld [vmem:[%s3342_s2 + $0x78] sm:$0xff]  ;;  %v3479_v44 = vld [vmem:[#allocation30_spill] sm:$0xff] }
 0x255   : > { %v2117_v48 = vpop.eup %2116  ;;  %v1548_v7 = vadd.f32 %v1484_v32, %v291_v6  ;;  %v1549_v20 = vadd.f32 %v1485_v0, %v292_v59 }
 0x256   : > { %v1448_v2 = vmul.f32 0.5, %v2117_v48 }
 0x257   : > { %v1617_v9 = vmax.f32 %v1548_v7, %v1549_v20 }
 0x258   : > { %v1486_v35 = vmul.f32 %v3476_v57, %v1448_v2  ;;  %v1487_v1 = vmul.f32 %v3477_v22, %v1448_v2  ;;  %v297_v2 = vld [vmem:[%s3342_s2 + $0x80] sm:$0xff]  ;;  %v3481_v57 = vld [vmem:[#allocation32_spill] sm:$0xff] }
 0x259   : > { %1618 = vmax.xlane.f32.xlu1 %v1617_v9  ;;  %v298_v9 = vld [vmem:[%s3342_s2 + $0x88] sm:$0xff] }
 0x25a   : > { %v1550_v25 = vadd.f32 %v1486_v35, %v293_v61  ;;  %v1551_v39 = vadd.f32 %v1487_v1, %v294_v3  ;;  %v3480_v61 = vld [vmem:[#allocation31_spill] sm:$0xff] }
 0x25c   : > { %v1620_v58 = vmax.f32 %v1550_v25, %v1551_v39 }
 0x25d   : > { %v2119_v30 = vpop.eup %2118 }
 0x25e   : > { %v1449_v16 = vmul.f32 0.5, %v2119_v30  ;;  %v1340_v17 = vpop.xlane.xlu0 %1339  ;;  %1621 = vmax.xlane.f32.xlu0 %v1620_v58 }
 0x25f   : > { %2120 = vrcp.f32 %v1340_v17  ;;  %v299_v17 = vld [vmem:[%s3342_s2 + $0x90] sm:$0xff] }
 0x260   : > { %v1488_v27 = vmul.f32 %v3478_v63, %v1449_v16  ;;  %v1489_v6 = vmul.f32 %v3479_v44, %v1449_v16 }
 0x262   : > { %v1552_v59 = vadd.f32 %v1488_v27, %v295_v14  ;;  %v1553_v32 = vadd.f32 %v1489_v6, %v296_v53  ;;  %v300_v14 = vld [vmem:[%s3342_s2 + $0x98] sm:$0xff]  ;;  %v3483_v27 = vld [vmem:[#allocation34_spill] sm:$0xff] }
 0x263   : > { %v3482_v53 = vld [vmem:[#allocation33_spill] sm:$0xff] }
 0x264   : > { %v1343_v0 = vpop.xlane.xlu1 %1342  ;;  %v1623_v48 = vmax.f32 %v1552_v59, %v1553_v32 }
 0x265   : > { %2122 = vrcp.f32 %v1343_v0 }
 0x266   : > { %1624 = vmax.xlane.f32.xlu1 %v1623_v48 }
 0x269   : > { %v2121_v7 = vpop.eup %2120 }
 0x26a   : > { %v1450_v20 = vmul.f32 0.5, %v2121_v7 }
 0x26c   : > { %v1490_v3 = vmul.f32 %v3480_v61, %v1450_v20  ;;  %v1491_v35 = vmul.f32 %v3481_v57, %v1450_v20  ;;  %v1346_v22 = vpop.xlane.xlu0 %1345  ;;  %v301_v20 = vld [vmem:[%s3342_s2 + $0xa0] sm:$0xff] }
 0x26d   : > { %2124 = vrcp.f32 %v1346_v22 }
 0x26e   : > { %v1554_v1 = vadd.f32 %v1490_v3, %v297_v2  ;;  %v1555_v25 = vadd.f32 %v1491_v35, %v298_v9  ;;  %v302_v2 = vld [vmem:[%s3342_s2 + $0xa8] sm:$0xff]  ;;  %v3485_v3 = vld [vmem:[#allocation36_spill] sm:$0xff] }
 0x26f   : > { %v2123_v39 = vpop.eup %2122  ;;  %v3484_v9 = vld [vmem:[#allocation35_spill] sm:$0xff] }
 0x270   : > { %v1451_v58 = vmul.f32 0.5, %v2123_v39  ;;  %v1626_v30 = vmax.f32 %v1554_v1, %v1555_v25 }
 0x271   : > { %v1349_v16 = vpop.xlane.xlu1 %1348 }
 0x272   : > { %v1492_v63 = vmul.f32 %v3482_v53, %v1451_v58  ;;  %v1493_v44 = vmul.f32 %v3483_v27, %v1451_v58  ;;  %2126 = vrcp.f32 %v1349_v16  ;;  %1627 = vmax.xlane.f32.xlu0 %v1626_v30  ;;  %v303_v58 = vld [vmem:[%s3342_s2 + $0xb0] sm:$0xff]  ;;  %v304_v30 = vld [vmem:[%s3342_s2 + $0xb8] sm:$0xff] }
 0x273   : > { %v3486_v16 = vld [vmem:[#allocation37_spill] sm:$0xff] }
 0x274   : > { %v1556_v6 = vadd.f32 %v1492_v63, %v299_v17  ;;  %v1557_v59 = vadd.f32 %v1493_v44, %v300_v14  ;;  %v3487_v14 = vld [vmem:[#allocation4_spill] sm:$0xff] }
 0x276   : > { %v1629_v32 = vmax.f32 %v1556_v6, %v1557_v59 }
 0x277   : > { %v2125_v0 = vpop.eup %2124 }
 0x278   : > { %v1452_v48 = vmul.f32 0.5, %v2125_v0  ;;  %1630 = vmax.xlane.f32.xlu1 %v1629_v32  ;;  %v305_v0 = vld [vmem:[%s3342_s2 + $0xc0] sm:$0xff] }
 0x279   : > { %v1352_v7 = vpop.xlane.xlu0 %1351 }
 0x27a   : > { %v1494_v61 = vmul.f32 %v3484_v9, %v1452_v48  ;;  %v1495_v57 = vmul.f32 %v3485_v3, %v1452_v48  ;;  %2128 = vrcp.f32 %v1352_v7  ;;  %v306_v48 = vld [vmem:[%s3342_s2 + $0xc8] sm:$0xff]  ;;  %v3488_v7 = vld [vmem:[#allocation2_spill] sm:$0xff] }
 0x27c   : > { %v2127_v35 = vpop.eup %2126  ;;  %v1558_v22 = vadd.f32 %v1494_v61, %v301_v20  ;;  %v1559_v1 = vadd.f32 %v1495_v57, %v302_v2  ;;  %v3489_v2 = vld [vmem:[#allocation38_spill] sm:$0xff] }
 0x27d   : > { %v1453_v25 = vmul.f32 0.5, %v2127_v35 }
 0x27e   : > { %v1632_v39 = vmax.f32 %v1558_v22, %v1559_v1 }
 0x27f   : > { %v1496_v17 = vmul.f32 %v3486_v16, %v1453_v25  ;;  %v1497_v53 = vmul.f32 %v3487_v14, %v1453_v25 }
 0x280   : > { %1633 = vmax.xlane.f32.xlu0 %v1632_v39 }
 0x281   : > { %v1560_v63 = vadd.f32 %v1496_v17, %v303_v58  ;;  %v1561_v27 = vadd.f32 %v1497_v53, %v304_v30 }
 0x283   : > { %v1635_v44 = vmax.f32 %v1560_v63, %v1561_v27  ;;  %v307_v63 = vld [vmem:[%s3342_s2 + $0xd0] sm:$0xff]  ;;  %v308_v27 = vld [vmem:[%s3342_s2 + $0xd8] sm:$0xff] }
 0x284   : > { %v2129_v6 = vpop.eup %2128 }
 0x285   : > { %v1454_v59 = vmul.f32 0.5, %v2129_v6  ;;  %1636 = vmax.xlane.f32.xlu1 %v1635_v44 }
 0x287   : > { %v1355_v32 = vpop.xlane.xlu1 %1354  ;;  %v1498_v20 = vmul.f32 %v3488_v7, %v1454_v59  ;;  %v1499_v9 = vmul.f32 %v3489_v2, %v1454_v59  ;;  %v309_v59 = vld [vmem:[%s3342_s2 + $0xe0] sm:$0xff] }
 0x288   : > { %2130 = vrcp.f32 %v1355_v32  ;;  %v310_v32 = vld [vmem:[%s3342_s2 + $0xe8] sm:$0xff] }
 0x289   : > { %v1358_v61 = vpop.xlane.xlu0 %1357  ;;  %v1562_v3 = vadd.f32 %v1498_v20, %v305_v0  ;;  %v1563_v57 = vadd.f32 %v1499_v9, %v306_v48 }
 0x28a   : > { %2132 = vrcp.f32 %v1358_v61 }
 0x28b   : > { %v1638_v1 = vmax.f32 %v1562_v3, %v1563_v57 }
 0x28c   : > { %v1361_v35 = vpop.xlane.xlu1 %1360 }
 0x28d   : > { %v1364_v22 = vpop.xlane.xlu0 %1363  ;;  %2134 = vrcp.f32 %v1361_v35  ;;  %1639 = vmax.xlane.f32.xlu0 %v1638_v1 }
 0x28e   : > { %2136 = vrcp.f32 %v1364_v22  ;;  %v311_v22 = vld [vmem:[%s3342_s2 + $0xf0] sm:$0xff] }
 0x290   : > { %v1367_v25 = vpop.xlane.xlu1 %1366 }
 0x291   : > { %v1370_v39 = vpop.xlane.xlu0 %1369  ;;  %2138 = vrcp.f32 %v1367_v25 }
 0x292   : > { %2140 = vrcp.f32 %v1370_v39  ;;  %v2131_v58 = vpop.eup %2130  ;;  %v313_v39 = vld [vmem:[%s3342_s2 + $0x100] sm:$0xff] }
 0x293   : > { %v1455_v16 = vmul.f32 0.5, %v2131_v58  ;;  %v314_v58 = vld [vmem:[%s3342_s2 + $0x108] sm:$0xff] }
 0x294   : > { %v2133_v30 = vpop.eup %2132  ;;  %v1373_v17 = vpop.xlane.xlu1 %1372 }
 0x295   : > { %v1456_v14 = vmul.f32 0.5, %v2133_v30  ;;  %v1376_v53 = vpop.xlane.xlu0 %1375  ;;  %2142 = vrcp.f32 %v1373_v17  ;;  %v1500_v44 = vmul.f32 %v2829_v33, %v1455_v16  ;;  %v1501_v6 = vmul.f32 %v2834_v31, %v1455_v16 }
 0x296   : > { %2144 = vrcp.f32 %v1376_v53 }
 0x297   : > { %v2135_v0 = vpop.eup %2134  ;;  %v1502_v48 = vmul.f32 %v2849_v8, %v1456_v14  ;;  %v1503_v7 = vmul.f32 %v2855_v4, %v1456_v14  ;;  %v1564_v9 = vadd.f32 %v1500_v44, %v307_v63  ;;  %v1565_v33 = vadd.f32 %v1501_v6, %v308_v27  ;;  %v312_v8 = vld [vmem:[%s3342_s2 + $0xf8] sm:$0xff] }
 0x298   : > { %v2137_v20 = vpop.eup %2136  ;;  %v1457_v2 = vmul.f32 0.5, %v2135_v0  ;;  %v1379_v61 = vpop.xlane.xlu1 %1378  ;;  %v315_v0 = vld [vmem:[%s3342_s2 + $0x110] sm:$0xff] }
 0x299   : > { %v1458_v31 = vmul.f32 0.5, %v2137_v20  ;;  %v1382_v3 = vpop.xlane.xlu0 %1381  ;;  %2146 = vrcp.f32 %v1379_v61  ;;  %v1566_v57 = vadd.f32 %v1502_v48, %v309_v59  ;;  %v1567_v35 = vadd.f32 %v1503_v7, %v310_v32  ;;  %v317_v20 = vld [vmem:[%s3342_s2 + $0x120] sm:$0xff] }
 0x29a   : > { %v1504_v4 = vmul.f32 %v2878_v46, %v1457_v2  ;;  %v1505_v1 = vmul.f32 %v2894_v13, %v1457_v2  ;;  %2148 = vrcp.f32 %v1382_v3  ;;  %v1641_v25 = vmax.f32 %v1564_v9, %v1565_v33  ;;  %v318_v2 = vld [vmem:[%s3342_s2 + $0x128] sm:$0xff] }
 0x29b   : > { %v2139_v30 = vpop.eup %2138  ;;  %v1506_v16 = vmul.f32 %v2867_v15, %v1458_v31  ;;  %v1507_v17 = vmul.f32 %v2872_v42, %v1458_v31  ;;  %v1644_v14 = vmax.f32 %v1566_v57, %v1567_v35  ;;  %v316_v15 = vld [vmem:[%s3342_s2 + $0x118] sm:$0xff] }
 0x29c   : > { %v2141_v53 = vpop.eup %2140  ;;  %v1459_v46 = vmul.f32 0.5, %v2139_v30  ;;  %1642 = vmax.xlane.f32.xlu1 %v1641_v25  ;;  %v1385_v13 = vpop.xlane.xlu1 %1384  ;;  %v1568_v63 = vadd.f32 %v1504_v4, %v311_v22  ;;  %v1569_v27 = vadd.f32 %v1505_v1, %v312_v8  ;;  %v319_v25 = vld [vmem:[%s3342_s2 + $0x130] sm:$0xff]  ;;  %v321_v30 = vld [vmem:[%s3342_s2 + $0x140] sm:$0xff] }
 0x29d   : > { %v1460_v44 = vmul.f32 0.5, %v2141_v53  ;;  %1645 = vmax.xlane.f32.xlu0 %v1644_v14  ;;  %v1388_v6 = vpop.xlane.xlu0 %1387  ;;  %2150 = vrcp.f32 %v1385_v13  ;;  %v1570_v59 = vadd.f32 %v1506_v16, %v313_v39  ;;  %v1571_v32 = vadd.f32 %v1507_v17, %v314_v58  ;;  %v322_v16 = vld [vmem:[%s3342_s2 + $0x148] sm:$0xff] }
 0x29e   : > { %v1508_v42 = vmul.f32 %v2917_v50, %v1459_v46  ;;  %v1509_v48 = vmul.f32 %v2920_v43, %v1459_v46  ;;  %2152 = vrcp.f32 %v1388_v6  ;;  %v1647_v7 = vmax.f32 %v1568_v63, %v1569_v27 }
 0x29f   : > { %v2143_v9 = vpop.eup %2142  ;;  %v1510_v33 = vmul.f32 %v2899_v34, %v1460_v44  ;;  %v1511_v61 = vmul.f32 %v2907_v28, %v1460_v44  ;;  %v1650_v31 = vmax.f32 %v1570_v59, %v1571_v32  ;;  %v320_v34 = vld [vmem:[%s3342_s2 + $0x138] sm:$0xff] }
 0x2a0   : > { %v2145_v3 = vpop.eup %2144  ;;  %v1461_v50 = vmul.f32 0.5, %v2143_v9  ;;  %1648 = vmax.xlane.f32.xlu1 %v1647_v7  ;;  %v1391_v43 = vpop.xlane.xlu1 %1390  ;;  %v1572_v57 = vadd.f32 %v1508_v42, %v315_v0  ;;  %v1573_v35 = vadd.f32 %v1509_v48, %v316_v15  ;;  %v323_v0 = vld [vmem:[%s3342_s2 + $0x150] sm:$0xff]  ;;  %v325_v48 = vld [vmem:[%s3342_s2 + $0x160] sm:$0xff]  ;;  %v326_v7 = vld [vmem:[%s3342_s2 + $0x168] sm:$0xff] }
 0x2a1   : > { %v1462_v22 = vmul.f32 0.5, %v2145_v3  ;;  %1651 = vmax.xlane.f32.xlu0 %v1650_v31  ;;  %v1394_v8 = vpop.xlane.xlu0 %1393  ;;  %2154 = vrcp.f32 %v1391_v43  ;;  %v1574_v4 = vadd.f32 %v1510_v33, %v317_v20  ;;  %v1575_v1 = vadd.f32 %v1511_v61, %v318_v2 }
 0x2a2   : > { %v1512_v28 = vmul.f32 %v2946_v26, %v1461_v50  ;;  %v1513_v39 = vmul.f32 %v2950_v19, %v1461_v50  ;;  %2156 = vrcp.f32 %v1394_v8  ;;  %v1653_v58 = vmax.f32 %v1572_v57, %v1573_v35  ;;  %v327_v35 = vld [vmem:[%s3342_s2 + $0x170] sm:$0xff] }
 0x2a3   : > { %v2147_v17 = vpop.eup %2146  ;;  %v1514_v14 = vmul.f32 %v2934_v56, %v1462_v22  ;;  %v1515_v53 = vmul.f32 %v2940_v45, %v1462_v22  ;;  %v1656_v46 = vmax.f32 %v1574_v4, %v1575_v1  ;;  %v324_v56 = vld [vmem:[%s3342_s2 + $0x158] sm:$0xff]  ;;  %v329_v1 = vld [vmem:[%s3342_s2 + $0x180] sm:$0xff] }
 0x2a4   : > { %v2149_v13 = vpop.eup %2148  ;;  %v1463_v26 = vmul.f32 0.5, %v2147_v17  ;;  %1654 = vmax.xlane.f32.xlu1 %v1653_v58  ;;  %v1397_v19 = vpop.xlane.xlu1 %1396  ;;  %v1576_v63 = vadd.f32 %v1512_v28, %v319_v25  ;;  %v1577_v27 = vadd.f32 %v1513_v39, %v320_v34  ;;  %v330_v25 = vld [vmem:[%s3342_s2 + $0x188] sm:$0xff] }
 0x2a5   : > { %v1464_v44 = vmul.f32 0.5, %v2149_v13  ;;  %1657 = vmax.xlane.f32.xlu0 %v1656_v46  ;;  %v1400_v6 = vpop.xlane.xlu0 %1399  ;;  %2158 = vrcp.f32 %v1397_v19  ;;  %v1578_v59 = vadd.f32 %v1514_v14, %v321_v30  ;;  %v1579_v32 = vadd.f32 %v1515_v53, %v322_v16  ;;  %v331_v46 = vld [vmem:[%s3342_s2 + $0x190] sm:$0xff] }
 0x2a6   : > { %v1516_v45 = vmul.f32 %v2983_v23, %v1463_v26  ;;  %v1517_v15 = vmul.f32 %v2989_v49, %v1463_v26  ;;  %2160 = vrcp.f32 %v1400_v6  ;;  %v1659_v42 = vmax.f32 %v1576_v63, %v1577_v27  ;;  %v333_v63 = vld [vmem:[%s3342_s2 + $0x1a0] sm:$0xff]  ;;  %v334_v27 = vld [vmem:[%s3342_s2 + $0x1a8] sm:$0xff] }
 0x2a7   : > { %v2151_v20 = vpop.eup %2150  ;;  %v1518_v2 = vmul.f32 %v2961_v52, %v1464_v44  ;;  %v1519_v9 = vmul.f32 %v2977_v51, %v1464_v44  ;;  %v1662_v33 = vmax.f32 %v1578_v59, %v1579_v32  ;;  %v328_v52 = vld [vmem:[%s3342_s2 + $0x178] sm:$0xff] }
 0x2a8   : > { %v2153_v61 = vpop.eup %2152  ;;  %v1465_v23 = vmul.f32 0.5, %v2151_v20  ;;  %1660 = vmax.xlane.f32.xlu1 %v1659_v42  ;;  %v1580_v49 = vadd.f32 %v1516_v45, %v323_v0  ;;  %v1581_v31 = vadd.f32 %v1517_v15, %v324_v56 }
 0x2a9   : > { %v1466_v3 = vmul.f32 0.5, %v2153_v61  ;;  %1663 = vmax.xlane.f32.xlu0 %v1662_v33  ;;  %v1406_v50 = vpop.xlane.xlu0 %1405  ;;  %v1582_v43 = vadd.f32 %v1518_v2, %v325_v48  ;;  %v1583_v57 = vadd.f32 %v1519_v9, %v326_v7  ;;  %v1403_v8 = vpop.xlane.xlu1 %1402  ;;  %v335_v48 = vld [vmem:[%s3342_s2 + $0x1b0] sm:$0xff]  ;;  %v337_v2 = vld [vmem:[%s3342_s2 + $0x1c0] sm:$0xff]  ;;  %v338_v9 = vld [vmem:[%s3342_s2 + $0x1c8] sm:$0xff] }
 0x2aa   : > { %v1520_v51 = vmul.f32 %v3001_v10, %v1465_v23  ;;  %v1521_v22 = vmul.f32 %v3003_v18, %v1465_v23  ;;  %2162 = vrcp.f32 %v1406_v50  ;;  %v1665_v4 = vmax.f32 %v1580_v49, %v1581_v31 }
 0x2ab   : > { %v2155_v34 = vpop.eup %2154  ;;  %v1522_v28 = vmul.f32 %v2995_v40, %v1466_v3  ;;  %v1523_v39 = vmul.f32 %v2999_v47, %v1466_v3  ;;  %2164 = vrcp.f32 %v1403_v8  ;;  %v1668_v10 = vmax.f32 %v1582_v43, %v1583_v57  ;;  %v332_v40 = vld [vmem:[%s3342_s2 + $0x198] sm:$0xff]  ;;  %v339_v8 = vld [vmem:[%s3342_s2 + $0x1d0] sm:$0xff] }
 0x2ac   : > { %v2157_v58 = vpop.eup %2156  ;;  %v1467_v18 = vmul.f32 0.5, %v2155_v34  ;;  %1666 = vmax.xlane.f32.xlu1 %v1665_v4  ;;  %v1584_v30 = vadd.f32 %v1520_v51, %v327_v35  ;;  %v1585_v16 = vadd.f32 %v1521_v22, %v328_v52  ;;  %v341_v52 = vld [vmem:[%s3342_s2 + $0x1e0] sm:$0xff]  ;;  %v340_v4 = vld [vmem:[%s3342_s2 + $0x1d8] sm:$0xff] }
 0x2ad   : > { %v1468_v17 = vmul.f32 0.5, %v2157_v58  ;;  %1669 = vmax.xlane.f32.xlu0 %v1668_v10  ;;  %v1586_v14 = vadd.f32 %v1522_v28, %v329_v1  ;;  %v1587_v53 = vadd.f32 %v1523_v39, %v330_v25  ;;  %v1409_v26 = vpop.xlane.xlu1 %1408 }
 0x2ae   : > { %v1524_v47 = vmul.f32 %v3029_v29, %v1467_v18  ;;  %v1525_v13 = vmul.f32 %v3033_v11, %v1467_v18  ;;  %v1671_v19 = vmax.f32 %v1584_v30, %v1585_v16  ;;  %2166 = vrcp.f32 %v1409_v26  ;;  %v343_v18 = vld [vmem:[%s3342_s2 + $0x1f0] sm:$0xff]  ;;  %v344_v30 = vld [vmem:[%s3342_s2 + $0x1f8] sm:$0xff] }
 0x2af   : > { %v2159_v44 = vpop.eup %2158  ;;  %v1526_v6 = vmul.f32 %v3007_v37, %v1468_v17  ;;  %v1527_v59 = vmul.f32 %v3011_v24, %v1468_v17  ;;  %v1674_v32 = vmax.f32 %v1586_v14, %v1587_v53  ;;  %v336_v37 = vld [vmem:[%s3342_s2 + $0x1b8] sm:$0xff] }
 0x2b0   : > { %v2161_v29 = vpop.eup %2160  ;;  %v1469_v0 = vmul.f32 0.5, %v2159_v44  ;;  %1672 = vmax.xlane.f32.xlu1 %v1671_v19  ;;  %v1588_v11 = vadd.f32 %v1524_v47, %v331_v46  ;;  %v1589_v56 = vadd.f32 %v1525_v13, %v332_v40 }
 0x2b1   : > { %v1470_v45 = vmul.f32 0.5, %v2161_v29  ;;  %1675 = vmax.xlane.f32.xlu0 %v1674_v32  ;;  %v1590_v15 = vadd.f32 %v1526_v6, %v333_v63  ;;  %v1591_v42 = vadd.f32 %v1527_v59, %v334_v27 }
 0x2b2   : > { %v1528_v24 = vmul.f32 %v3039_v60, %v1469_v0  ;;  %v1529_v7 = vmul.f32 %v3043_v12, %v1469_v0  ;;  %v1677_v20 = vmax.f32 %v1588_v11, %v1589_v56 }
 0x2b3   : > { %v1530_v33 = vmul.f32 %v3037_v62, %v1470_v45  ;;  %v1531_v61 = vmul.f32 %v3047_v41, %v1470_v45  ;;  %v1680_v23 = vmax.f32 %v1590_v15, %v1591_v42  ;;  %v342_v62 = vld [vmem:[%s3342_s2 + $0x1e8] sm:$0xff] }
 0x2b4   : > { %v2163_v49 = vpop.eup %2162  ;;  %1678 = vmax.xlane.f32.xlu1 %v1677_v20  ;;  %v1592_v31 = vadd.f32 %v1528_v24, %v335_v48  ;;  %v1593_v60 = vadd.f32 %v1529_v7, %v336_v37 }
 0x2b5   : > { %v2165_v3 = vpop.eup %2164  ;;  %v1472_v12 = vmul.f32 0.5, %v2163_v49  ;;  %1681 = vmax.xlane.f32.xlu0 %v1680_v23  ;;  %v1594_v50 = vadd.f32 %v1530_v33, %v337_v2  ;;  %v1595_v43 = vadd.f32 %v1531_v61, %v338_v9 }
 0x2b6   : > { %v1471_v57 = vmul.f32 0.5, %v2165_v3  ;;  %v1683_v35 = vmax.f32 %v1592_v31, %v1593_v60 }
 0x2b7   : > { %v1534_v41 = vmul.f32 %v3049_v21, %v1472_v12  ;;  %v1535_v51 = vmul.f32 %v3053_v38, %v1472_v12  ;;  %v1686_v22 = vmax.f32 %v1594_v50, %v1595_v43 }
 0x2b8   : > { %v1532_v1 = vmul.f32 %v3059_v55, %v1471_v57  ;;  %v1533_v25 = vmul.f32 %v3061_v36, %v1471_v57  ;;  %1684 = vmax.xlane.f32.xlu1 %v1683_v35  ;;  %v2167_v34 = vpop.eup %2166 }
 0x2b9   : > { %1687 = vmax.xlane.f32.xlu0 %v1686_v22  ;;  %v1598_v28 = vadd.f32 %v1534_v41, %v341_v52  ;;  %v1599_v21 = vadd.f32 %v1535_v51, %v342_v62  ;;  %v1473_v39 = vmul.f32 0.5, %v2167_v34 }
 0x2ba   : > { %v1596_v38 = vadd.f32 %v1532_v1, %v339_v8  ;;  %v1597_v10 = vadd.f32 %v1533_v25, %v340_v4 }
 0x2bb   : > { %v1692_v58 = vmax.f32 %v1598_v28, %v1599_v21  ;;  %v1536_v55 = vmul.f32 %v3063_v5, %v1473_v39  ;;  %v1537_v36 = vmul.f32 %v3067_v54, %v1473_v39 }
 0x2bc   : > { %v1689_v16 = vmax.f32 %v1596_v38, %v1597_v10 }
 0x2bd   : > { %1693 = vmax.xlane.f32.xlu0 %v1692_v58  ;;  %v1600_v17 = vadd.f32 %v1536_v55, %v343_v18  ;;  %v1601_v14 = vadd.f32 %v1537_v36, %v344_v30 }
 0x2be   : > { %1690 = vmax.xlane.f32.xlu1 %v1689_v16 }
 0x2bf   : > { %v1695_v53 = vmax.f32 %v1600_v17, %v1601_v14 }
 0x2c2   : > { %1696 = vmax.xlane.f32.xlu1 %v1695_v53 }
 0x2d0   : > { %v1604_v46 = vpop.xlane.xlu0 %1603 }
 0x2d4   : > { %v1607_v40 = vpop.xlane.xlu1 %1606 }
 0x2d5   : > { %v1698_v13 = vadd.f32 %v1607_v40, %v1604_v46 }
 0x2d8   : > { %v1610_v47 = vpop.xlane.xlu0 %1609 }
 0x2d9   : > { %v1699_v19 = vadd.f32 %v1698_v13, %v1610_v47 }
 0x2dc   : > { %v1613_v26 = vpop.xlane.xlu1 %1612 }
 0x2dd   : > { %v1700_v27 = vadd.f32 %v1699_v19, %v1613_v26 }
 0x2e0   : > { %v1616_v63 = vpop.xlane.xlu0 %1615 }
 0x2e1   : > { %v1701_v6 = vadd.f32 %v1700_v27, %v1616_v63 }
 0x2e6   : > { %v1619_v44 = vpop.xlane.xlu1 %1618 }
 0x2e7   : > { %v1702_v59 = vadd.f32 %v1701_v6, %v1619_v44 }
 0x2eb   : > { %v1622_v5 = vpop.xlane.xlu0 %1621 }
 0x2ec   : > { %v1703_v32 = vadd.f32 %v1702_v59, %v1622_v5 }
 0x2f3   : > { %v1625_v54 = vpop.xlane.xlu1 %1624 }
 0x2f4   : > { %v1704_v0 = vadd.f32 %v1703_v32, %v1625_v54 }
 0x2ff   : > { %v1628_v29 = vpop.xlane.xlu0 %1627 }
 0x300   : > { %v1705_v56 = vadd.f32 %v1704_v0, %v1628_v29 }
 0x305   : > { %v1631_v11 = vpop.xlane.xlu1 %1630 }
 0x306   : > { %v1706_v15 = vadd.f32 %v1705_v56, %v1631_v11 }
 0x30d   : > { %v1634_v45 = vpop.xlane.xlu0 %1633 }
 0x30e   : > { %v1707_v48 = vadd.f32 %v1706_v15, %v1634_v45 }
 0x312   : > { %v1637_v42 = vpop.xlane.xlu1 %1636 }
 0x313   : > { %v1708_v24 = vadd.f32 %v1707_v48, %v1637_v42 }
 0x31a   : > { %v1640_v37 = vpop.xlane.xlu0 %1639 }
 0x31b   : > { %v1709_v7 = vadd.f32 %v1708_v24, %v1640_v37 }
 0x329   : > { %v1643_v20 = vpop.xlane.xlu1 %1642 }
 0x32a   : > { %v1710_v2 = vadd.f32 %v1709_v7, %v1643_v20  ;;  %v1646_v9 = vpop.xlane.xlu0 %1645 }
 0x32c   : > { %v1711_v33 = vadd.f32 %v1710_v2, %v1646_v9 }
 0x32d   : > { %v1649_v61 = vpop.xlane.xlu1 %1648 }
 0x32e   : > { %v1652_v23 = vpop.xlane.xlu0 %1651  ;;  %v1712_v49 = vadd.f32 %v1711_v33, %v1649_v61 }
 0x330   : > { %v1713_v31 = vadd.f32 %v1712_v49, %v1652_v23 }
 0x331   : > { %v1655_v60 = vpop.xlane.xlu1 %1654 }
 0x332   : > { %v1658_v3 = vpop.xlane.xlu0 %1657  ;;  %v1714_v12 = vadd.f32 %v1713_v31, %v1655_v60 }
 0x334   : > { %v1715_v50 = vadd.f32 %v1714_v12, %v1658_v3 }
 0x335   : > { %v1661_v43 = vpop.xlane.xlu1 %1660 }
 0x336   : > { %v1664_v57 = vpop.xlane.xlu0 %1663  ;;  %v1716_v35 = vadd.f32 %v1715_v50, %v1661_v43 }
 0x338   : > { %v1717_v52 = vadd.f32 %v1716_v35, %v1664_v57 }
 0x339   : > { %v1667_v62 = vpop.xlane.xlu1 %1666 }
 0x33a   : > { %v1670_v41 = vpop.xlane.xlu0 %1669  ;;  %v1718_v51 = vadd.f32 %v1717_v52, %v1667_v62 }
 0x33c   : > { %v1719_v22 = vadd.f32 %v1718_v51, %v1670_v41 }
 0x33d   : > { %v1673_v8 = vpop.xlane.xlu1 %1672 }
 0x33e   : > { %v1676_v4 = vpop.xlane.xlu0 %1675  ;;  %v1720_v1 = vadd.f32 %v1719_v22, %v1673_v8 }
 0x340   : > { %v1721_v25 = vadd.f32 %v1720_v1, %v1676_v4 }
 0x341   : > { %v1679_v34 = vpop.xlane.xlu1 %1678 }
 0x342   : > { %v1682_v28 = vpop.xlane.xlu0 %1681  ;;  %v1722_v21 = vadd.f32 %v1721_v25, %v1679_v34 }
 0x344   : > { %v1723_v39 = vadd.f32 %v1722_v21, %v1682_v28 }
 0x345   : > { %v1685_v38 = vpop.xlane.xlu1 %1684 }
 0x346   : > { %v1724_v10 = vadd.f32 %v1723_v39, %v1685_v38  ;;  %v1688_v58 = vpop.xlane.xlu0 %1687 }
 0x348   : > { %v1725_v18 = vadd.f32 %v1724_v10, %v1688_v58 }
 0x34a   : > { %v1694_v36 = vpop.xlane.xlu0 %1693 }
 0x34b   : > { %v1691_v30 = vpop.xlane.xlu1 %1690 }
 0x34c   : > { %v1726_v55 = vadd.f32 %v1725_v18, %v1691_v30 }
 0x34e   : > { %v1727_v16 = vadd.f32 %v1726_v55, %v1694_v36 }
 0x34f   : > { %v1697_v17 = vpop.xlane.xlu1 %1696 }
 0x350   : > { %v1728_v14 = vadd.f32 %v1727_v16, %v1697_v17 }
 0x352   : > { %v1729_v53 = vrot.slane %v1728_v14, 4 }
 0x354   : > { %v1730_v46 = vadd.f32 %v1729_v53, %v1728_v14 }
 0x356   : > { %v1731_v40 = vrot.slane %v1730_v46, 2 }
 0x358   : > { %v1732_v47 = vadd.f32 %v1731_v40, %v1730_v46 }
 0x35a   : > { %v1733_v13 = vrot.slane %v1732_v47, 1 }
 0x35c   : > { %v1734_v26 = vadd.f32 %v1733_v13, %v1732_v47 }
 0x35e   : > { %1736 = vst.msk [vmem:[%s247_s16] sm:$0x1] %vm1735_vm2, %v1734_v26 }
 0x35f PF: > { %s13_s14 = sadd.s32 1, %s2190_s14   ;;  %s3490_s12 = smov %s2186_s13 }
 0x360   : > { %p10_p5 = scmp.ge.s32.totalorder %s13_s14, 4   ;;  %s3491_s13 = smov %s3493_s15 }
 0x362   :  { %12 = sbr.rel (!%p10_p5) target bundleno = 2 (0x2), region = 68 }

</bundles_post_ra>
